<compile_context>
chip_gen: v7x
topology: tpu7x:2x2x1
jax: 0.10.0
libtpu: 0.0.40
codegen_flags: <defaults>
</compile_context>

<pallas_src>
import jax
import jax.numpy as jnp
import numpy as np
from jax.experimental import pallas as pl
from jax.experimental.pallas import tpu as pltpu

# ---- model hyperparameters (BLOCKS_NUM / OUTPUT_LABELS chosen small) ----
BLOCKS_NUM = 8
OUTPUT_LABELS = ["a", "b", "c", "d", "e", "f"]
INPUT_DIM = BLOCKS_NUM + 1          # 9
OUTPUT_DIM = len(OUTPUT_LABELS)     # 6
HIDDEN_DIM = 64
NUM_ITERATIONS = 5
LN_EPS = 1e-5

# weight-slab indices: each entry is an (H, H) matrix stored (in, out)
(W_ENC, W_XR, W_XZ, W_XN, W_HR, W_HZ, W_HN,
 W_FBR, W_FBZ, W_FBN, W_D1, W_D2) = range(12)
NUM_W = 12
# bias-slab row indices: each row is a (1, H) vector
(B_ENC, B_LNG, B_LNB, B_R, B_Z, B_IN, B_HHN,
 B_FBR, B_FBZ, B_FBN, B_FB0R, B_FB0Z, B_FB0N, B_D1, B_D2, B_PAD) = range(16)
NUM_B = 16


def feedback_gru_kernel(x_ref, w_ref, b_ref, out_ref):
    H = HIDDEN_DIM
    Bq = x_ref.shape[0]

    b_all = b_ref[...]                                   # (16, H)

    def brow(k):                                         # static row -> (1, H)
        return b_all[k:k + 1, :]

    def mm(a, k):                                        # a @ w_slab[k] on MXU
        return jnp.dot(a, w_ref[k], preferred_element_type=jnp.float32)

    # ---- encoder: Linear -> ReLU -> LayerNorm ----
    x = x_ref[...]                                       # (B, H); lanes >= INPUT_DIM are zero
    act = jnp.maximum(mm(x, W_ENC) + brow(B_ENC), 0.0)
    mean = jnp.mean(act, axis=-1, keepdims=True)
    var = jnp.mean(jnp.square(act - mean), axis=-1, keepdims=True)
    encoded = (act - mean) * jax.lax.rsqrt(var + LN_EPS) * brow(B_LNG) + brow(B_LNB)

    # ---- loop-invariant per-gate input contributions (encoded never changes) ----
    a_r = mm(encoded, W_XR) + brow(B_R)                  # b_ih_r + b_hh_r folded
    a_z = mm(encoded, W_XZ) + brow(B_Z)                  # b_ih_z + b_hh_z folded
    a_n = mm(encoded, W_XN) + brow(B_IN)                 # only b_ih_n (b_hh_n stays inside r*(...))

    def body(_, carry):
        h, hid, fb_r, fb_z, fb_n = carry
        ph_r = mm(h, W_HR)
        ph_z = mm(h, W_HZ)
        ph_n = mm(h, W_HN)
        r = jax.nn.sigmoid(a_r + fb_r + ph_r)
        z = jax.nn.sigmoid(a_z + fb_z + ph_z)
        n = jnp.tanh(a_n + fb_n + r * (ph_n + brow(B_HHN)))
        h = (1.0 - z) * n + z * h
        hid = jnp.maximum(mm(h, W_D1) + brow(B_D1), 0.0)
        # fused feedback: y @ W_ih[H:] == hid @ (d2_w @ W_ih[H:]) + d2_b @ W_ih[H:]
        fb_r = mm(hid, W_FBR) + brow(B_FBR)
        fb_z = mm(hid, W_FBZ) + brow(B_FBZ)
        fb_n = mm(hid, W_FBN) + brow(B_FBN)
        return h, hid, fb_r, fb_z, fb_n

    init = (encoded,
            jnp.zeros((Bq, H), jnp.float32),
            jnp.broadcast_to(brow(B_FB0R), (Bq, H)),     # y0 @ W_ih[H:] (precomputed host-side)
            jnp.broadcast_to(brow(B_FB0Z), (Bq, H)),
            jnp.broadcast_to(brow(B_FB0N), (Bq, H)))
    _, hid, _, _, _ = jax.lax.fori_loop(0, NUM_ITERATIONS, body, init,
                                        unroll=True)

    # real decoder output, computed once (lane-padded to H; first OUTPUT_DIM are real)
    y = mm(hid, W_D2) + brow(B_D2)
    out_ref[...] = y[:, :OUTPUT_DIM].astype(out_ref.dtype)


def make_params(key):
    """Deterministic parameter init (shapes match the PyTorch module)."""
    ks = jax.random.split(key, 10)

    def rnd(k, shape, scale=0.1):
        return (scale * jax.random.normal(k, shape)).astype(jnp.float32)

    return {
        "enc_w": rnd(ks[0], (INPUT_DIM, HIDDEN_DIM)),
        "enc_b": rnd(ks[1], (1, HIDDEN_DIM)),
        "ln_g": jnp.ones((1, HIDDEN_DIM), jnp.float32),
        "ln_b": jnp.zeros((1, HIDDEN_DIM), jnp.float32),
        # GRUCell(hidden_dim + output_dim, hidden_dim); gate order (r, z, n)
        "w_ih": rnd(ks[2], (HIDDEN_DIM + OUTPUT_DIM, 3 * HIDDEN_DIM)),
        "w_hh": rnd(ks[3], (HIDDEN_DIM, 3 * HIDDEN_DIM)),
        "b_ih": rnd(ks[4], (1, 3 * HIDDEN_DIM)),
        "b_hh": rnd(ks[5], (1, 3 * HIDDEN_DIM)),
        "d1_w": rnd(ks[6], (HIDDEN_DIM, HIDDEN_DIM)),
        "d1_b": rnd(ks[7], (1, HIDDEN_DIM)),
        "d2_w": rnd(ks[8], (HIDDEN_DIM, OUTPUT_DIM)),
        "d2_b": rnd(ks[9], (1, OUTPUT_DIM)),
        "y0": jnp.zeros((1, OUTPUT_DIM), jnp.float32),
    }


def pack_params(p):
    """Host-side re-layout: per-gate splits, feedback fusion, two slabs."""
    H, O = HIDDEN_DIM, OUTPUT_DIM
    f32 = jnp.float32

    def gates(w):
        return w[..., :H], w[..., H:2 * H], w[..., 2 * H:]

    wih_x = p["w_ih"][:H]            # (H, 3H) — encoded part of the GRU input
    wih_y = p["w_ih"][H:]            # (O, 3H) — feedback (y) part
    wx_r, wx_z, wx_n = gates(wih_x)
    wy_r, wy_z, wy_n = gates(wih_y)
    wh_r, wh_z, wh_n = gates(p["w_hh"])
    bih_r, bih_z, bih_n = gates(p["b_ih"])
    bhh_r, bhh_z, bhh_n = gates(p["b_hh"])

    # fuse decoder output -> GRU input:  y @ wy_g = hid @ (d2_w @ wy_g) + d2_b @ wy_g
    wfb = [p["d2_w"] @ wy for wy in (wy_r, wy_z, wy_n)]        # (H, H) each
    bfb = [p["d2_b"] @ wy for wy in (wy_r, wy_z, wy_n)]        # (1, H) each
    fb0 = [p["y0"] @ wy for wy in (wy_r, wy_z, wy_n)]          # (1, H) each (iteration 0)

    enc_w_pad = jnp.zeros((H, H), f32).at[:INPUT_DIM, :].set(p["enc_w"])
    d2_w_pad = jnp.zeros((H, H), f32).at[:, :O].set(p["d2_w"])
    d2_b_pad = jnp.zeros((1, H), f32).at[:, :O].set(p["d2_b"])

    w_slab = jnp.stack(
        [enc_w_pad, wx_r, wx_z, wx_n, wh_r, wh_z, wh_n,
         wfb[0], wfb[1], wfb[2], p["d1_w"], d2_w_pad], axis=0).astype(f32)

    b_slab = jnp.concatenate(
        [p["enc_b"], p["ln_g"], p["ln_b"],
         bih_r + bhh_r, bih_z + bhh_z, bih_n, bhh_n,
         bfb[0], bfb[1], bfb[2], fb0[0], fb0[1], fb0[2],
         p["d1_b"], d2_b_pad, jnp.zeros((1, H), f32)], axis=0).astype(f32)

    return w_slab, b_slab                                      # (12,H,H), (16,H)


def feedback_gru_forward(x, p, *, batch_block=256):
    H = HIDDEN_DIM
    B = x.shape[0]
    w_slab, b_slab = pack_params(p)

    # pad input lanes to H with zeros (matches the zero-padded rows of enc_w)
    x_pad = jnp.zeros((B, H), jnp.float32).at[:, :INPUT_DIM].set(
        x.astype(jnp.float32))

    tb = min(B, batch_block)
    b_padded = pl.cdiv(B, tb) * tb
    if b_padded != B:
        x_pad = jnp.pad(x_pad, ((0, b_padded - B), (0, 0)))
    grid = (b_padded // tb,)

    matmuls = 1 + 3 + NUM_ITERATIONS * 7 + 1                   # all (·,H)x(H,H)
    cost = pl.CostEstimate(
        flops=int(b_padded * matmuls * 2 * H * H),
        transcendentals=int(b_padded * NUM_ITERATIONS * 3 * H),
        bytes_accessed=int(4 * (x_pad.size + w_slab.size + b_slab.size
                                + b_padded * OUTPUT_DIM)),
    )

    out = pl.pallas_call(
        feedback_gru_kernel,
        out_shape=jax.ShapeDtypeStruct((b_padded, OUTPUT_DIM), jnp.float32),
        grid=grid,
        in_specs=[
            pl.BlockSpec((tb, H), lambda i: (i, 0)),           # x (batch-blocked)
            pl.BlockSpec((NUM_W, H, H), lambda i: (0, 0, 0)),  # weight slab (resident)
            pl.BlockSpec((NUM_B, H), lambda i: (0, 0)),        # bias slab (resident)
        ],
        out_specs=pl.BlockSpec((tb, OUTPUT_DIM), lambda i: (i, 0)),
        compiler_params=pltpu.CompilerParams(
            dimension_semantics=("parallel",)),
        cost_estimate=cost,
    )(x_pad, w_slab, b_slab)
    return out[:B]


def feedback_gru_reference(x, p):
    """Pure-JAX reference (matches the PyTorch module exactly)."""
    pre = x @ p["enc_w"] + p["enc_b"]
    act = jnp.maximum(pre, 0.0)
    mean = jnp.mean(act, axis=-1, keepdims=True)
    var = jnp.mean((act - mean) ** 2, axis=-1, keepdims=True)
    encoded = (act - mean) / jnp.sqrt(var + LN_EPS) * p["ln_g"] + p["ln_b"]

    H = HIDDEN_DIM
    y = jnp.broadcast_to(p["y0"], (x.shape[0], OUTPUT_DIM))
    h = encoded
    for _ in range(NUM_ITERATIONS):
        gru_in = jnp.concatenate([encoded, y], axis=1)
        gi = gru_in @ p["w_ih"] + p["b_ih"]
        gh = h @ p["w_hh"] + p["b_hh"]
        r = jax.nn.sigmoid(gi[:, :H] + gh[:, :H])
        z = jax.nn.sigmoid(gi[:, H:2 * H] + gh[:, H:2 * H])
        n = jnp.tanh(gi[:, 2 * H:] + r * gh[:, 2 * H:])
        h = (1.0 - z) * n + z * h
        hid = jnp.maximum(h @ p["d1_w"] + p["d1_b"], 0.0)
        y = hid @ p["d2_w"] + p["d2_b"]
    return y


if __name__ == "__main__":
    key = jax.random.PRNGKey(0)
    k_x, k_p = jax.random.split(key)

    batch = 2
    x = jax.random.normal(k_x, (batch, INPUT_DIM), dtype=jnp.float32)
    params = make_params(k_p)

    out = jax.block_until_ready(feedback_gru_forward(x, params))
    ref = feedback_gru_reference(x, params)
    np.testing.assert_allclose(np.asarray(out), np.asarray(ref),
                               rtol=1e-4, atol=1e-4)
    print("KERNEL_OK")
</pallas_src>

<mosaic_0001>
module attributes {stable_mosaic.version = 11 : i64} {
  func.func @feedback_gru_kernel(%arg0: i32, %arg1: memref<2x64xf32, #tpu.memory_space<vmem>>, %arg2: memref<12x64x64xf32, #tpu.memory_space<vmem>>, %arg3: memref<16x64xf32, #tpu.memory_space<vmem>>, %arg4: memref<2x6xf32, #tpu.memory_space<vmem>>) attributes {dimension_semantics = [#tpu.dimension_semantics<parallel>], iteration_bounds = array<i64: 1>, scalar_prefetch = 0 : i64, scratch_operands = 0 : i64, tpu.core_type = #tpu.core_type<tc>, window_params = [{transform_indices = @transform_0, window_bounds = array<i64: 2, 64>}, {pipeline_mode = #tpu.pipeline_mode<synchronous>, transform_indices = @transform_1, window_bounds = array<i64: 12, 64, 64>}, {pipeline_mode = #tpu.pipeline_mode<synchronous>, transform_indices = @transform_2, window_bounds = array<i64: 16, 64>}, {transform_indices = @transform_3, window_bounds = array<i64: 2, 6>}]} {
    %c0 = arith.constant 0 : index
    %c0_0 = arith.constant 0 : index
    %0 = vector.load %arg3[%c0, %c0_0] : memref<16x64xf32, #tpu.memory_space<vmem>>, vector<16x64xf32>
    %c0_1 = arith.constant 0 : index
    %c0_2 = arith.constant 0 : index
    %1 = vector.load %arg1[%c0_1, %c0_2] : memref<2x64xf32, #tpu.memory_space<vmem>>, vector<2x64xf32>
    %c0_3 = arith.constant 0 : index
    %c0_4 = arith.constant 0 : index
    %c0_5 = arith.constant 0 : index
    %2 = vector.load %arg2[%c0_3, %c0_4, %c0_5] : memref<12x64x64xf32, #tpu.memory_space<vmem>>, vector<1x64x64xf32>
    %3 = vector.shape_cast %2 : vector<1x64x64xf32> to vector<64x64xf32>
    %cst = arith.constant dense<0.000000e+00> : vector<2x64xf32>
    %4 = tpu.matmul %1, %3, %cst {dimension_numbers = #tpu.dot_dimension_numbers<[1], [0], [0], [1], [0, 0, 1, 1], [], []>} : vector<2x64xf32>, vector<64x64xf32>, vector<2x64xf32> -> vector<2x64xf32>
    %5 = vector.extract_strided_slice %0 {offsets = [0, 0], sizes = [1, 64], strides = [1, 1]} : vector<16x64xf32> to vector<1x64xf32>
    %6 = vector.broadcast %5 : vector<1x64xf32> to vector<2x64xf32>
    %7 = arith.addf %4, %6 : vector<2x64xf32>
    %cst_6 = arith.constant 0.000000e+00 : f32
    %8 = vector.broadcast %cst_6 : f32 to vector<2x64xf32>
    %9 = arith.maximumf %7, %8 : vector<2x64xf32>
    %cst_7 = arith.constant dense<0.000000e+00> : vector<2xf32>
    %10 = vector.multi_reduction <add>, %9, %cst_7 [1] : vector<2x64xf32> to vector<2xf32>
    %11 = vector.shape_cast %10 : vector<2xf32> to vector<2x1xf32>
    %cst_8 = arith.constant 6.400000e+01 : f32
    %12 = vector.broadcast %cst_8 : f32 to vector<2x1xf32>
    %13 = arith.divf %11, %12 : vector<2x1xf32>
    %14 = vector.broadcast %13 : vector<2x1xf32> to vector<2x64xf32>
    %15 = arith.subf %9, %14 : vector<2x64xf32>
    %16 = arith.mulf %15, %15 : vector<2x64xf32>
    %cst_9 = arith.constant dense<0.000000e+00> : vector<2xf32>
    %17 = vector.multi_reduction <add>, %16, %cst_9 [1] : vector<2x64xf32> to vector<2xf32>
    %18 = vector.shape_cast %17 : vector<2xf32> to vector<2x1xf32>
    %cst_10 = arith.constant 6.400000e+01 : f32
    %19 = vector.broadcast %cst_10 : f32 to vector<2x1xf32>
    %20 = arith.divf %18, %19 : vector<2x1xf32>
    %21 = vector.broadcast %13 : vector<2x1xf32> to vector<2x64xf32>
    %22 = arith.subf %9, %21 : vector<2x64xf32>
    %cst_11 = arith.constant 9.99999974E-6 : f32
    %23 = vector.broadcast %cst_11 : f32 to vector<2x1xf32>
    %24 = arith.addf %20, %23 : vector<2x1xf32>
    %25 = math.rsqrt %24 : vector<2x1xf32>
    %26 = vector.broadcast %25 : vector<2x1xf32> to vector<2x64xf32>
    %27 = arith.mulf %22, %26 : vector<2x64xf32>
    %28 = vector.extract_strided_slice %0 {offsets = [1, 0], sizes = [1, 64], strides = [1, 1]} : vector<16x64xf32> to vector<1x64xf32>
    %29 = vector.broadcast %28 : vector<1x64xf32> to vector<2x64xf32>
    %30 = arith.mulf %27, %29 : vector<2x64xf32>
    %31 = vector.extract_strided_slice %0 {offsets = [2, 0], sizes = [1, 64], strides = [1, 1]} : vector<16x64xf32> to vector<1x64xf32>
    %32 = vector.broadcast %31 : vector<1x64xf32> to vector<2x64xf32>
    %33 = arith.addf %30, %32 : vector<2x64xf32>
    %c1 = arith.constant 1 : index
    %c0_12 = arith.constant 0 : index
    %c0_13 = arith.constant 0 : index
    %34 = vector.load %arg2[%c1, %c0_12, %c0_13] : memref<12x64x64xf32, #tpu.memory_space<vmem>>, vector<1x64x64xf32>
    %35 = vector.shape_cast %34 : vector<1x64x64xf32> to vector<64x64xf32>
    %cst_14 = arith.constant dense<0.000000e+00> : vector<2x64xf32>
    %36 = tpu.matmul %33, %35, %cst_14 {dimension_numbers = #tpu.dot_dimension_numbers<[1], [0], [0], [1], [0, 0, 1, 1], [], []>} : vector<2x64xf32>, vector<64x64xf32>, vector<2x64xf32> -> vector<2x64xf32>
    %37 = vector.extract_strided_slice %0 {offsets = [3, 0], sizes = [1, 64], strides = [1, 1]} : vector<16x64xf32> to vector<1x64xf32>
    %38 = vector.broadcast %37 : vector<1x64xf32> to vector<2x64xf32>
    %39 = arith.addf %36, %38 : vector<2x64xf32>
    %c2 = arith.constant 2 : index
    %c0_15 = arith.constant 0 : index
    %c0_16 = arith.constant 0 : index
    %40 = vector.load %arg2[%c2, %c0_15, %c0_16] : memref<12x64x64xf32, #tpu.memory_space<vmem>>, vector<1x64x64xf32>
    %41 = vector.shape_cast %40 : vector<1x64x64xf32> to vector<64x64xf32>
    %cst_17 = arith.constant dense<0.000000e+00> : vector<2x64xf32>
    %42 = tpu.matmul %33, %41, %cst_17 {dimension_numbers = #tpu.dot_dimension_numbers<[1], [0], [0], [1], [0, 0, 1, 1], [], []>} : vector<2x64xf32>, vector<64x64xf32>, vector<2x64xf32> -> vector<2x64xf32>
    %43 = vector.extract_strided_slice %0 {offsets = [4, 0], sizes = [1, 64], strides = [1, 1]} : vector<16x64xf32> to vector<1x64xf32>
    %44 = vector.broadcast %43 : vector<1x64xf32> to vector<2x64xf32>
    %45 = arith.addf %42, %44 : vector<2x64xf32>
    %c3 = arith.constant 3 : index
    %c0_18 = arith.constant 0 : index
    %c0_19 = arith.constant 0 : index
    %46 = vector.load %arg2[%c3, %c0_18, %c0_19] : memref<12x64x64xf32, #tpu.memory_space<vmem>>, vector<1x64x64xf32>
    %47 = vector.shape_cast %46 : vector<1x64x64xf32> to vector<64x64xf32>
    %cst_20 = arith.constant dense<0.000000e+00> : vector<2x64xf32>
    %48 = tpu.matmul %33, %47, %cst_20 {dimension_numbers = #tpu.dot_dimension_numbers<[1], [0], [0], [1], [0, 0, 1, 1], [], []>} : vector<2x64xf32>, vector<64x64xf32>, vector<2x64xf32> -> vector<2x64xf32>
    %49 = vector.extract_strided_slice %0 {offsets = [5, 0], sizes = [1, 64], strides = [1, 1]} : vector<16x64xf32> to vector<1x64xf32>
    %50 = vector.broadcast %49 : vector<1x64xf32> to vector<2x64xf32>
    %51 = arith.addf %48, %50 : vector<2x64xf32>
    %cst_21 = arith.constant 0.000000e+00 : f32
    %52 = vector.broadcast %cst_21 : f32 to vector<2x64xf32>
    %53 = vector.extract_strided_slice %0 {offsets = [10, 0], sizes = [1, 64], strides = [1, 1]} : vector<16x64xf32> to vector<1x64xf32>
    %54 = vector.shape_cast %53 : vector<1x64xf32> to vector<1x64xf32>
    %55 = vector.broadcast %54 : vector<1x64xf32> to vector<2x64xf32>
    %56 = vector.extract_strided_slice %0 {offsets = [11, 0], sizes = [1, 64], strides = [1, 1]} : vector<16x64xf32> to vector<1x64xf32>
    %57 = vector.shape_cast %56 : vector<1x64xf32> to vector<1x64xf32>
    %58 = vector.broadcast %57 : vector<1x64xf32> to vector<2x64xf32>
    %59 = vector.extract_strided_slice %0 {offsets = [12, 0], sizes = [1, 64], strides = [1, 1]} : vector<16x64xf32> to vector<1x64xf32>
    %60 = vector.shape_cast %59 : vector<1x64xf32> to vector<1x64xf32>
    %61 = vector.broadcast %60 : vector<1x64xf32> to vector<2x64xf32>
    %c0_i32 = arith.constant 0 : i32
    %c4 = arith.constant 4 : index
    %c0_22 = arith.constant 0 : index
    %c0_23 = arith.constant 0 : index
    %62 = vector.load %arg2[%c4, %c0_22, %c0_23] : memref<12x64x64xf32, #tpu.memory_space<vmem>>, vector<1x64x64xf32>
    %63 = vector.shape_cast %62 : vector<1x64x64xf32> to vector<64x64xf32>
    %cst_24 = arith.constant dense<0.000000e+00> : vector<2x64xf32>
    %64 = tpu.matmul %33, %63, %cst_24 {dimension_numbers = #tpu.dot_dimension_numbers<[1], [0], [0], [1], [0, 0, 1, 1], [], []>} : vector<2x64xf32>, vector<64x64xf32>, vector<2x64xf32> -> vector<2x64xf32>
    %c5 = arith.constant 5 : index
    %c0_25 = arith.constant 0 : index
    %c0_26 = arith.constant 0 : index
    %65 = vector.load %arg2[%c5, %c0_25, %c0_26] : memref<12x64x64xf32, #tpu.memory_space<vmem>>, vector<1x64x64xf32>
    %66 = vector.shape_cast %65 : vector<1x64x64xf32> to vector<64x64xf32>
    %cst_27 = arith.constant dense<0.000000e+00> : vector<2x64xf32>
    %67 = tpu.matmul %33, %66, %cst_27 {dimension_numbers = #tpu.dot_dimension_numbers<[1], [0], [0], [1], [0, 0, 1, 1], [], []>} : vector<2x64xf32>, vector<64x64xf32>, vector<2x64xf32> -> vector<2x64xf32>
    %c6 = arith.constant 6 : index
    %c0_28 = arith.constant 0 : index
    %c0_29 = arith.constant 0 : index
    %68 = vector.load %arg2[%c6, %c0_28, %c0_29] : memref<12x64x64xf32, #tpu.memory_space<vmem>>, vector<1x64x64xf32>
    %69 = vector.shape_cast %68 : vector<1x64x64xf32> to vector<64x64xf32>
    %cst_30 = arith.constant dense<0.000000e+00> : vector<2x64xf32>
    %70 = tpu.matmul %33, %69, %cst_30 {dimension_numbers = #tpu.dot_dimension_numbers<[1], [0], [0], [1], [0, 0, 1, 1], [], []>} : vector<2x64xf32>, vector<64x64xf32>, vector<2x64xf32> -> vector<2x64xf32>
    %71 = arith.addf %39, %55 : vector<2x64xf32>
    %72 = arith.addf %71, %64 : vector<2x64xf32>
    %73 = arith.negf %72 : vector<2x64xf32>
    %74 = math.exp %73 : vector<2x64xf32>
    %cst_31 = arith.constant 1.000000e+00 : f32
    %75 = vector.broadcast %cst_31 : f32 to vector<2x64xf32>
    %76 = arith.addf %75, %74 : vector<2x64xf32>
    %77 = arith.divf %75, %76 : vector<2x64xf32>
    %78 = arith.addf %45, %58 : vector<2x64xf32>
    %79 = arith.addf %78, %67 : vector<2x64xf32>
    %80 = arith.negf %79 : vector<2x64xf32>
    %81 = math.exp %80 : vector<2x64xf32>
    %cst_32 = arith.constant 1.000000e+00 : f32
    %82 = vector.broadcast %cst_32 : f32 to vector<2x64xf32>
    %83 = arith.addf %82, %81 : vector<2x64xf32>
    %84 = arith.divf %82, %83 : vector<2x64xf32>
    %85 = arith.addf %51, %61 : vector<2x64xf32>
    %86 = vector.extract_strided_slice %0 {offsets = [6, 0], sizes = [1, 64], strides = [1, 1]} : vector<16x64xf32> to vector<1x64xf32>
    %87 = vector.broadcast %86 : vector<1x64xf32> to vector<2x64xf32>
    %88 = arith.addf %70, %87 : vector<2x64xf32>
    %89 = arith.mulf %77, %88 : vector<2x64xf32>
    %90 = arith.addf %85, %89 : vector<2x64xf32>
    %91 = math.tanh %90 : vector<2x64xf32>
    %cst_33 = arith.constant 1.000000e+00 : f32
    %92 = vector.broadcast %cst_33 : f32 to vector<2x64xf32>
    %93 = arith.subf %92, %84 : vector<2x64xf32>
    %94 = arith.mulf %93, %91 : vector<2x64xf32>
    %95 = arith.mulf %84, %33 : vector<2x64xf32>
    %96 = arith.addf %94, %95 : vector<2x64xf32>
    %c10 = arith.constant 10 : index
    %c0_34 = arith.constant 0 : index
    %c0_35 = arith.constant 0 : index
    %97 = vector.load %arg2[%c10, %c0_34, %c0_35] : memref<12x64x64xf32, #tpu.memory_space<vmem>>, vector<1x64x64xf32>
    %98 = vector.shape_cast %97 : vector<1x64x64xf32> to vector<64x64xf32>
    %cst_36 = arith.constant dense<0.000000e+00> : vector<2x64xf32>
    %99 = tpu.matmul %96, %98, %cst_36 {dimension_numbers = #tpu.dot_dimension_numbers<[1], [0], [0], [1], [0, 0, 1, 1], [], []>} : vector<2x64xf32>, vector<64x64xf32>, vector<2x64xf32> -> vector<2x64xf32>
    %100 = vector.extract_strided_slice %0 {offsets = [13, 0], sizes = [1, 64], strides = [1, 1]} : vector<16x64xf32> to vector<1x64xf32>
    %101 = vector.broadcast %100 : vector<1x64xf32> to vector<2x64xf32>
    %102 = arith.addf %99, %101 : vector<2x64xf32>
    %cst_37 = arith.constant 0.000000e+00 : f32
    %103 = vector.broadcast %cst_37 : f32 to vector<2x64xf32>
    %104 = arith.maximumf %102, %103 : vector<2x64xf32>
    %c7 = arith.constant 7 : index
    %c0_38 = arith.constant 0 : index
    %c0_39 = arith.constant 0 : index
    %105 = vector.load %arg2[%c7, %c0_38, %c0_39] : memref<12x64x64xf32, #tpu.memory_space<vmem>>, vector<1x64x64xf32>
    %106 = vector.shape_cast %105 : vector<1x64x64xf32> to vector<64x64xf32>
    %cst_40 = arith.constant dense<0.000000e+00> : vector<2x64xf32>
    %107 = tpu.matmul %104, %106, %cst_40 {dimension_numbers = #tpu.dot_dimension_numbers<[1], [0], [0], [1], [0, 0, 1, 1], [], []>} : vector<2x64xf32>, vector<64x64xf32>, vector<2x64xf32> -> vector<2x64xf32>
    %108 = vector.extract_strided_slice %0 {offsets = [7, 0], sizes = [1, 64], strides = [1, 1]} : vector<16x64xf32> to vector<1x64xf32>
    %109 = vector.broadcast %108 : vector<1x64xf32> to vector<2x64xf32>
    %110 = arith.addf %107, %109 : vector<2x64xf32>
    %c8 = arith.constant 8 : index
    %c0_41 = arith.constant 0 : index
    %c0_42 = arith.constant 0 : index
    %111 = vector.load %arg2[%c8, %c0_41, %c0_42] : memref<12x64x64xf32, #tpu.memory_space<vmem>>, vector<1x64x64xf32>
    %112 = vector.shape_cast %111 : vector<1x64x64xf32> to vector<64x64xf32>
    %cst_43 = arith.constant dense<0.000000e+00> : vector<2x64xf32>
    %113 = tpu.matmul %104, %112, %cst_43 {dimension_numbers = #tpu.dot_dimension_numbers<[1], [0], [0], [1], [0, 0, 1, 1], [], []>} : vector<2x64xf32>, vector<64x64xf32>, vector<2x64xf32> -> vector<2x64xf32>
    %114 = vector.extract_strided_slice %0 {offsets = [8, 0], sizes = [1, 64], strides = [1, 1]} : vector<16x64xf32> to vector<1x64xf32>
    %115 = vector.broadcast %114 : vector<1x64xf32> to vector<2x64xf32>
    %116 = arith.addf %113, %115 : vector<2x64xf32>
    %c9 = arith.constant 9 : index
    %c0_44 = arith.constant 0 : index
    %c0_45 = arith.constant 0 : index
    %117 = vector.load %arg2[%c9, %c0_44, %c0_45] : memref<12x64x64xf32, #tpu.memory_space<vmem>>, vector<1x64x64xf32>
    %118 = vector.shape_cast %117 : vector<1x64x64xf32> to vector<64x64xf32>
    %cst_46 = arith.constant dense<0.000000e+00> : vector<2x64xf32>
    %119 = tpu.matmul %104, %118, %cst_46 {dimension_numbers = #tpu.dot_dimension_numbers<[1], [0], [0], [1], [0, 0, 1, 1], [], []>} : vector<2x64xf32>, vector<64x64xf32>, vector<2x64xf32> -> vector<2x64xf32>
    %120 = vector.extract_strided_slice %0 {offsets = [9, 0], sizes = [1, 64], strides = [1, 1]} : vector<16x64xf32> to vector<1x64xf32>
    %121 = vector.broadcast %120 : vector<1x64xf32> to vector<2x64xf32>
    %122 = arith.addf %119, %121 : vector<2x64xf32>
    %c1_i32 = arith.constant 1 : i32
    %c4_47 = arith.constant 4 : index
    %c0_48 = arith.constant 0 : index
    %c0_49 = arith.constant 0 : index
    %123 = vector.load %arg2[%c4_47, %c0_48, %c0_49] : memref<12x64x64xf32, #tpu.memory_space<vmem>>, vector<1x64x64xf32>
    %124 = vector.shape_cast %123 : vector<1x64x64xf32> to vector<64x64xf32>
    %cst_50 = arith.constant dense<0.000000e+00> : vector<2x64xf32>
    %125 = tpu.matmul %96, %124, %cst_50 {dimension_numbers = #tpu.dot_dimension_numbers<[1], [0], [0], [1], [0, 0, 1, 1], [], []>} : vector<2x64xf32>, vector<64x64xf32>, vector<2x64xf32> -> vector<2x64xf32>
    %c5_51 = arith.constant 5 : index
    %c0_52 = arith.constant 0 : index
    %c0_53 = arith.constant 0 : index
    %126 = vector.load %arg2[%c5_51, %c0_52, %c0_53] : memref<12x64x64xf32, #tpu.memory_space<vmem>>, vector<1x64x64xf32>
    %127 = vector.shape_cast %126 : vector<1x64x64xf32> to vector<64x64xf32>
    %cst_54 = arith.constant dense<0.000000e+00> : vector<2x64xf32>
    %128 = tpu.matmul %96, %127, %cst_54 {dimension_numbers = #tpu.dot_dimension_numbers<[1], [0], [0], [1], [0, 0, 1, 1], [], []>} : vector<2x64xf32>, vector<64x64xf32>, vector<2x64xf32> -> vector<2x64xf32>
    %c6_55 = arith.constant 6 : index
    %c0_56 = arith.constant 0 : index
    %c0_57 = arith.constant 0 : index
    %129 = vector.load %arg2[%c6_55, %c0_56, %c0_57] : memref<12x64x64xf32, #tpu.memory_space<vmem>>, vector<1x64x64xf32>
    %130 = vector.shape_cast %129 : vector<1x64x64xf32> to vector<64x64xf32>
    %cst_58 = arith.constant dense<0.000000e+00> : vector<2x64xf32>
    %131 = tpu.matmul %96, %130, %cst_58 {dimension_numbers = #tpu.dot_dimension_numbers<[1], [0], [0], [1], [0, 0, 1, 1], [], []>} : vector<2x64xf32>, vector<64x64xf32>, vector<2x64xf32> -> vector<2x64xf32>
    %132 = arith.addf %39, %110 : vector<2x64xf32>
    %133 = arith.addf %132, %125 : vector<2x64xf32>
    %134 = arith.negf %133 : vector<2x64xf32>
    %135 = math.exp %134 : vector<2x64xf32>
    %cst_59 = arith.constant 1.000000e+00 : f32
    %136 = vector.broadcast %cst_59 : f32 to vector<2x64xf32>
    %137 = arith.addf %136, %135 : vector<2x64xf32>
    %138 = arith.divf %136, %137 : vector<2x64xf32>
    %139 = arith.addf %45, %116 : vector<2x64xf32>
    %140 = arith.addf %139, %128 : vector<2x64xf32>
    %141 = arith.negf %140 : vector<2x64xf32>
    %142 = math.exp %141 : vector<2x64xf32>
    %cst_60 = arith.constant 1.000000e+00 : f32
    %143 = vector.broadcast %cst_60 : f32 to vector<2x64xf32>
    %144 = arith.addf %143, %142 : vector<2x64xf32>
    %145 = arith.divf %143, %144 : vector<2x64xf32>
    %146 = arith.addf %51, %122 : vector<2x64xf32>
    %147 = vector.extract_strided_slice %0 {offsets = [6, 0], sizes = [1, 64], strides = [1, 1]} : vector<16x64xf32> to vector<1x64xf32>
    %148 = vector.broadcast %147 : vector<1x64xf32> to vector<2x64xf32>
    %149 = arith.addf %131, %148 : vector<2x64xf32>
    %150 = arith.mulf %138, %149 : vector<2x64xf32>
    %151 = arith.addf %146, %150 : vector<2x64xf32>
    %152 = math.tanh %151 : vector<2x64xf32>
    %cst_61 = arith.constant 1.000000e+00 : f32
    %153 = vector.broadcast %cst_61 : f32 to vector<2x64xf32>
    %154 = arith.subf %153, %145 : vector<2x64xf32>
    %155 = arith.mulf %154, %152 : vector<2x64xf32>
    %156 = arith.mulf %145, %96 : vector<2x64xf32>
    %157 = arith.addf %155, %156 : vector<2x64xf32>
    %c10_62 = arith.constant 10 : index
    %c0_63 = arith.constant 0 : index
    %c0_64 = arith.constant 0 : index
    %158 = vector.load %arg2[%c10_62, %c0_63, %c0_64] : memref<12x64x64xf32, #tpu.memory_space<vmem>>, vector<1x64x64xf32>
    %159 = vector.shape_cast %158 : vector<1x64x64xf32> to vector<64x64xf32>
    %cst_65 = arith.constant dense<0.000000e+00> : vector<2x64xf32>
    %160 = tpu.matmul %157, %159, %cst_65 {dimension_numbers = #tpu.dot_dimension_numbers<[1], [0], [0], [1], [0, 0, 1, 1], [], []>} : vector<2x64xf32>, vector<64x64xf32>, vector<2x64xf32> -> vector<2x64xf32>
    %161 = vector.extract_strided_slice %0 {offsets = [13, 0], sizes = [1, 64], strides = [1, 1]} : vector<16x64xf32> to vector<1x64xf32>
    %162 = vector.broadcast %161 : vector<1x64xf32> to vector<2x64xf32>
    %163 = arith.addf %160, %162 : vector<2x64xf32>
    %cst_66 = arith.constant 0.000000e+00 : f32
    %164 = vector.broadcast %cst_66 : f32 to vector<2x64xf32>
    %165 = arith.maximumf %163, %164 : vector<2x64xf32>
    %c7_67 = arith.constant 7 : index
    %c0_68 = arith.constant 0 : index
    %c0_69 = arith.constant 0 : index
    %166 = vector.load %arg2[%c7_67, %c0_68, %c0_69] : memref<12x64x64xf32, #tpu.memory_space<vmem>>, vector<1x64x64xf32>
    %167 = vector.shape_cast %166 : vector<1x64x64xf32> to vector<64x64xf32>
    %cst_70 = arith.constant dense<0.000000e+00> : vector<2x64xf32>
    %168 = tpu.matmul %165, %167, %cst_70 {dimension_numbers = #tpu.dot_dimension_numbers<[1], [0], [0], [1], [0, 0, 1, 1], [], []>} : vector<2x64xf32>, vector<64x64xf32>, vector<2x64xf32> -> vector<2x64xf32>
    %169 = vector.extract_strided_slice %0 {offsets = [7, 0], sizes = [1, 64], strides = [1, 1]} : vector<16x64xf32> to vector<1x64xf32>
    %170 = vector.broadcast %169 : vector<1x64xf32> to vector<2x64xf32>
    %171 = arith.addf %168, %170 : vector<2x64xf32>
    %c8_71 = arith.constant 8 : index
    %c0_72 = arith.constant 0 : index
    %c0_73 = arith.constant 0 : index
    %172 = vector.load %arg2[%c8_71, %c0_72, %c0_73] : memref<12x64x64xf32, #tpu.memory_space<vmem>>, vector<1x64x64xf32>
    %173 = vector.shape_cast %172 : vector<1x64x64xf32> to vector<64x64xf32>
    %cst_74 = arith.constant dense<0.000000e+00> : vector<2x64xf32>
    %174 = tpu.matmul %165, %173, %cst_74 {dimension_numbers = #tpu.dot_dimension_numbers<[1], [0], [0], [1], [0, 0, 1, 1], [], []>} : vector<2x64xf32>, vector<64x64xf32>, vector<2x64xf32> -> vector<2x64xf32>
    %175 = vector.extract_strided_slice %0 {offsets = [8, 0], sizes = [1, 64], strides = [1, 1]} : vector<16x64xf32> to vector<1x64xf32>
    %176 = vector.broadcast %175 : vector<1x64xf32> to vector<2x64xf32>
    %177 = arith.addf %174, %176 : vector<2x64xf32>
    %c9_75 = arith.constant 9 : index
    %c0_76 = arith.constant 0 : index
    %c0_77 = arith.constant 0 : index
    %178 = vector.load %arg2[%c9_75, %c0_76, %c0_77] : memref<12x64x64xf32, #tpu.memory_space<vmem>>, vector<1x64x64xf32>
    %179 = vector.shape_cast %178 : vector<1x64x64xf32> to vector<64x64xf32>
    %cst_78 = arith.constant dense<0.000000e+00> : vector<2x64xf32>
    %180 = tpu.matmul %165, %179, %cst_78 {dimension_numbers = #tpu.dot_dimension_numbers<[1], [0], [0], [1], [0, 0, 1, 1], [], []>} : vector<2x64xf32>, vector<64x64xf32>, vector<2x64xf32> -> vector<2x64xf32>
    %181 = vector.extract_strided_slice %0 {offsets = [9, 0], sizes = [1, 64], strides = [1, 1]} : vector<16x64xf32> to vector<1x64xf32>
    %182 = vector.broadcast %181 : vector<1x64xf32> to vector<2x64xf32>
    %183 = arith.addf %180, %182 : vector<2x64xf32>
    %c2_i32 = arith.constant 2 : i32
    %c4_79 = arith.constant 4 : index
    %c0_80 = arith.constant 0 : index
    %c0_81 = arith.constant 0 : index
    %184 = vector.load %arg2[%c4_79, %c0_80, %c0_81] : memref<12x64x64xf32, #tpu.memory_space<vmem>>, vector<1x64x64xf32>
    %185 = vector.shape_cast %184 : vector<1x64x64xf32> to vector<64x64xf32>
    %cst_82 = arith.constant dense<0.000000e+00> : vector<2x64xf32>
    %186 = tpu.matmul %157, %185, %cst_82 {dimension_numbers = #tpu.dot_dimension_numbers<[1], [0], [0], [1], [0, 0, 1, 1], [], []>} : vector<2x64xf32>, vector<64x64xf32>, vector<2x64xf32> -> vector<2x64xf32>
    %c5_83 = arith.constant 5 : index
    %c0_84 = arith.constant 0 : index
    %c0_85 = arith.constant 0 : index
    %187 = vector.load %arg2[%c5_83, %c0_84, %c0_85] : memref<12x64x64xf32, #tpu.memory_space<vmem>>, vector<1x64x64xf32>
    %188 = vector.shape_cast %187 : vector<1x64x64xf32> to vector<64x64xf32>
    %cst_86 = arith.constant dense<0.000000e+00> : vector<2x64xf32>
    %189 = tpu.matmul %157, %188, %cst_86 {dimension_numbers = #tpu.dot_dimension_numbers<[1], [0], [0], [1], [0, 0, 1, 1], [], []>} : vector<2x64xf32>, vector<64x64xf32>, vector<2x64xf32> -> vector<2x64xf32>
    %c6_87 = arith.constant 6 : index
    %c0_88 = arith.constant 0 : index
    %c0_89 = arith.constant 0 : index
    %190 = vector.load %arg2[%c6_87, %c0_88, %c0_89] : memref<12x64x64xf32, #tpu.memory_space<vmem>>, vector<1x64x64xf32>
    %191 = vector.shape_cast %190 : vector<1x64x64xf32> to vector<64x64xf32>
    %cst_90 = arith.constant dense<0.000000e+00> : vector<2x64xf32>
    %192 = tpu.matmul %157, %191, %cst_90 {dimension_numbers = #tpu.dot_dimension_numbers<[1], [0], [0], [1], [0, 0, 1, 1], [], []>} : vector<2x64xf32>, vector<64x64xf32>, vector<2x64xf32> -> vector<2x64xf32>
    %193 = arith.addf %39, %171 : vector<2x64xf32>
    %194 = arith.addf %193, %186 : vector<2x64xf32>
    %195 = arith.negf %194 : vector<2x64xf32>
    %196 = math.exp %195 : vector<2x64xf32>
    %cst_91 = arith.constant 1.000000e+00 : f32
    %197 = vector.broadcast %cst_91 : f32 to vector<2x64xf32>
    %198 = arith.addf %197, %196 : vector<2x64xf32>
    %199 = arith.divf %197, %198 : vector<2x64xf32>
    %200 = arith.addf %45, %177 : vector<2x64xf32>
    %201 = arith.addf %200, %189 : vector<2x64xf32>
    %202 = arith.negf %201 : vector<2x64xf32>
    %203 = math.exp %202 : vector<2x64xf32>
    %cst_92 = arith.constant 1.000000e+00 : f32
    %204 = vector.broadcast %cst_92 : f32 to vector<2x64xf32>
    %205 = arith.addf %204, %203 : vector<2x64xf32>
    %206 = arith.divf %204, %205 : vector<2x64xf32>
    %207 = arith.addf %51, %183 : vector<2x64xf32>
    %208 = vector.extract_strided_slice %0 {offsets = [6, 0], sizes = [1, 64], strides = [1, 1]} : vector<16x64xf32> to vector<1x64xf32>
    %209 = vector.broadcast %208 : vector<1x64xf32> to vector<2x64xf32>
    %210 = arith.addf %192, %209 : vector<2x64xf32>
    %211 = arith.mulf %199, %210 : vector<2x64xf32>
    %212 = arith.addf %207, %211 : vector<2x64xf32>
    %213 = math.tanh %212 : vector<2x64xf32>
    %cst_93 = arith.constant 1.000000e+00 : f32
    %214 = vector.broadcast %cst_93 : f32 to vector<2x64xf32>
    %215 = arith.subf %214, %206 : vector<2x64xf32>
    %216 = arith.mulf %215, %213 : vector<2x64xf32>
    %217 = arith.mulf %206, %157 : vector<2x64xf32>
    %218 = arith.addf %216, %217 : vector<2x64xf32>
    %c10_94 = arith.constant 10 : index
    %c0_95 = arith.constant 0 : index
    %c0_96 = arith.constant 0 : index
    %219 = vector.load %arg2[%c10_94, %c0_95, %c0_96] : memref<12x64x64xf32, #tpu.memory_space<vmem>>, vector<1x64x64xf32>
    %220 = vector.shape_cast %219 : vector<1x64x64xf32> to vector<64x64xf32>
    %cst_97 = arith.constant dense<0.000000e+00> : vector<2x64xf32>
    %221 = tpu.matmul %218, %220, %cst_97 {dimension_numbers = #tpu.dot_dimension_numbers<[1], [0], [0], [1], [0, 0, 1, 1], [], []>} : vector<2x64xf32>, vector<64x64xf32>, vector<2x64xf32> -> vector<2x64xf32>
    %222 = vector.extract_strided_slice %0 {offsets = [13, 0], sizes = [1, 64], strides = [1, 1]} : vector<16x64xf32> to vector<1x64xf32>
    %223 = vector.broadcast %222 : vector<1x64xf32> to vector<2x64xf32>
    %224 = arith.addf %221, %223 : vector<2x64xf32>
    %cst_98 = arith.constant 0.000000e+00 : f32
    %225 = vector.broadcast %cst_98 : f32 to vector<2x64xf32>
    %226 = arith.maximumf %224, %225 : vector<2x64xf32>
    %c7_99 = arith.constant 7 : index
    %c0_100 = arith.constant 0 : index
    %c0_101 = arith.constant 0 : index
    %227 = vector.load %arg2[%c7_99, %c0_100, %c0_101] : memref<12x64x64xf32, #tpu.memory_space<vmem>>, vector<1x64x64xf32>
    %228 = vector.shape_cast %227 : vector<1x64x64xf32> to vector<64x64xf32>
    %cst_102 = arith.constant dense<0.000000e+00> : vector<2x64xf32>
    %229 = tpu.matmul %226, %228, %cst_102 {dimension_numbers = #tpu.dot_dimension_numbers<[1], [0], [0], [1], [0, 0, 1, 1], [], []>} : vector<2x64xf32>, vector<64x64xf32>, vector<2x64xf32> -> vector<2x64xf32>
    %230 = vector.extract_strided_slice %0 {offsets = [7, 0], sizes = [1, 64], strides = [1, 1]} : vector<16x64xf32> to vector<1x64xf32>
    %231 = vector.broadcast %230 : vector<1x64xf32> to vector<2x64xf32>
    %232 = arith.addf %229, %231 : vector<2x64xf32>
    %c8_103 = arith.constant 8 : index
    %c0_104 = arith.constant 0 : index
    %c0_105 = arith.constant 0 : index
    %233 = vector.load %arg2[%c8_103, %c0_104, %c0_105] : memref<12x64x64xf32, #tpu.memory_space<vmem>>, vector<1x64x64xf32>
    %234 = vector.shape_cast %233 : vector<1x64x64xf32> to vector<64x64xf32>
    %cst_106 = arith.constant dense<0.000000e+00> : vector<2x64xf32>
    %235 = tpu.matmul %226, %234, %cst_106 {dimension_numbers = #tpu.dot_dimension_numbers<[1], [0], [0], [1], [0, 0, 1, 1], [], []>} : vector<2x64xf32>, vector<64x64xf32>, vector<2x64xf32> -> vector<2x64xf32>
    %236 = vector.extract_strided_slice %0 {offsets = [8, 0], sizes = [1, 64], strides = [1, 1]} : vector<16x64xf32> to vector<1x64xf32>
    %237 = vector.broadcast %236 : vector<1x64xf32> to vector<2x64xf32>
    %238 = arith.addf %235, %237 : vector<2x64xf32>
    %c9_107 = arith.constant 9 : index
    %c0_108 = arith.constant 0 : index
    %c0_109 = arith.constant 0 : index
    %239 = vector.load %arg2[%c9_107, %c0_108, %c0_109] : memref<12x64x64xf32, #tpu.memory_space<vmem>>, vector<1x64x64xf32>
    %240 = vector.shape_cast %239 : vector<1x64x64xf32> to vector<64x64xf32>
    %cst_110 = arith.constant dense<0.000000e+00> : vector<2x64xf32>
    %241 = tpu.matmul %226, %240, %cst_110 {dimension_numbers = #tpu.dot_dimension_numbers<[1], [0], [0], [1], [0, 0, 1, 1], [], []>} : vector<2x64xf32>, vector<64x64xf32>, vector<2x64xf32> -> vector<2x64xf32>
    %242 = vector.extract_strided_slice %0 {offsets = [9, 0], sizes = [1, 64], strides = [1, 1]} : vector<16x64xf32> to vector<1x64xf32>
    %243 = vector.broadcast %242 : vector<1x64xf32> to vector<2x64xf32>
    %244 = arith.addf %241, %243 : vector<2x64xf32>
    %c3_i32 = arith.constant 3 : i32
    %c4_111 = arith.constant 4 : index
    %c0_112 = arith.constant 0 : index
    %c0_113 = arith.constant 0 : index
    %245 = vector.load %arg2[%c4_111, %c0_112, %c0_113] : memref<12x64x64xf32, #tpu.memory_space<vmem>>, vector<1x64x64xf32>
    %246 = vector.shape_cast %245 : vector<1x64x64xf32> to vector<64x64xf32>
    %cst_114 = arith.constant dense<0.000000e+00> : vector<2x64xf32>
    %247 = tpu.matmul %218, %246, %cst_114 {dimension_numbers = #tpu.dot_dimension_numbers<[1], [0], [0], [1], [0, 0, 1, 1], [], []>} : vector<2x64xf32>, vector<64x64xf32>, vector<2x64xf32> -> vector<2x64xf32>
    %c5_115 = arith.constant 5 : index
    %c0_116 = arith.constant 0 : index
    %c0_117 = arith.constant 0 : index
    %248 = vector.load %arg2[%c5_115, %c0_116, %c0_117] : memref<12x64x64xf32, #tpu.memory_space<vmem>>, vector<1x64x64xf32>
    %249 = vector.shape_cast %248 : vector<1x64x64xf32> to vector<64x64xf32>
    %cst_118 = arith.constant dense<0.000000e+00> : vector<2x64xf32>
    %250 = tpu.matmul %218, %249, %cst_118 {dimension_numbers = #tpu.dot_dimension_numbers<[1], [0], [0], [1], [0, 0, 1, 1], [], []>} : vector<2x64xf32>, vector<64x64xf32>, vector<2x64xf32> -> vector<2x64xf32>
    %c6_119 = arith.constant 6 : index
    %c0_120 = arith.constant 0 : index
    %c0_121 = arith.constant 0 : index
    %251 = vector.load %arg2[%c6_119, %c0_120, %c0_121] : memref<12x64x64xf32, #tpu.memory_space<vmem>>, vector<1x64x64xf32>
    %252 = vector.shape_cast %251 : vector<1x64x64xf32> to vector<64x64xf32>
    %cst_122 = arith.constant dense<0.000000e+00> : vector<2x64xf32>
    %253 = tpu.matmul %218, %252, %cst_122 {dimension_numbers = #tpu.dot_dimension_numbers<[1], [0], [0], [1], [0, 0, 1, 1], [], []>} : vector<2x64xf32>, vector<64x64xf32>, vector<2x64xf32> -> vector<2x64xf32>
    %254 = arith.addf %39, %232 : vector<2x64xf32>
    %255 = arith.addf %254, %247 : vector<2x64xf32>
    %256 = arith.negf %255 : vector<2x64xf32>
    %257 = math.exp %256 : vector<2x64xf32>
    %cst_123 = arith.constant 1.000000e+00 : f32
    %258 = vector.broadcast %cst_123 : f32 to vector<2x64xf32>
    %259 = arith.addf %258, %257 : vector<2x64xf32>
    %260 = arith.divf %258, %259 : vector<2x64xf32>
    %261 = arith.addf %45, %238 : vector<2x64xf32>
    %262 = arith.addf %261, %250 : vector<2x64xf32>
    %263 = arith.negf %262 : vector<2x64xf32>
    %264 = math.exp %263 : vector<2x64xf32>
    %cst_124 = arith.constant 1.000000e+00 : f32
    %265 = vector.broadcast %cst_124 : f32 to vector<2x64xf32>
    %266 = arith.addf %265, %264 : vector<2x64xf32>
    %267 = arith.divf %265, %266 : vector<2x64xf32>
    %268 = arith.addf %51, %244 : vector<2x64xf32>
    %269 = vector.extract_strided_slice %0 {offsets = [6, 0], sizes = [1, 64], strides = [1, 1]} : vector<16x64xf32> to vector<1x64xf32>
    %270 = vector.broadcast %269 : vector<1x64xf32> to vector<2x64xf32>
    %271 = arith.addf %253, %270 : vector<2x64xf32>
    %272 = arith.mulf %260, %271 : vector<2x64xf32>
    %273 = arith.addf %268, %272 : vector<2x64xf32>
    %274 = math.tanh %273 : vector<2x64xf32>
    %cst_125 = arith.constant 1.000000e+00 : f32
    %275 = vector.broadcast %cst_125 : f32 to vector<2x64xf32>
    %276 = arith.subf %275, %267 : vector<2x64xf32>
    %277 = arith.mulf %276, %274 : vector<2x64xf32>
    %278 = arith.mulf %267, %218 : vector<2x64xf32>
    %279 = arith.addf %277, %278 : vector<2x64xf32>
    %c10_126 = arith.constant 10 : index
    %c0_127 = arith.constant 0 : index
    %c0_128 = arith.constant 0 : index
    %280 = vector.load %arg2[%c10_126, %c0_127, %c0_128] : memref<12x64x64xf32, #tpu.memory_space<vmem>>, vector<1x64x64xf32>
    %281 = vector.shape_cast %280 : vector<1x64x64xf32> to vector<64x64xf32>
    %cst_129 = arith.constant dense<0.000000e+00> : vector<2x64xf32>
    %282 = tpu.matmul %279, %281, %cst_129 {dimension_numbers = #tpu.dot_dimension_numbers<[1], [0], [0], [1], [0, 0, 1, 1], [], []>} : vector<2x64xf32>, vector<64x64xf32>, vector<2x64xf32> -> vector<2x64xf32>
    %283 = vector.extract_strided_slice %0 {offsets = [13, 0], sizes = [1, 64], strides = [1, 1]} : vector<16x64xf32> to vector<1x64xf32>
    %284 = vector.broadcast %283 : vector<1x64xf32> to vector<2x64xf32>
    %285 = arith.addf %282, %284 : vector<2x64xf32>
    %cst_130 = arith.constant 0.000000e+00 : f32
    %286 = vector.broadcast %cst_130 : f32 to vector<2x64xf32>
    %287 = arith.maximumf %285, %286 : vector<2x64xf32>
    %c7_131 = arith.constant 7 : index
    %c0_132 = arith.constant 0 : index
    %c0_133 = arith.constant 0 : index
    %288 = vector.load %arg2[%c7_131, %c0_132, %c0_133] : memref<12x64x64xf32, #tpu.memory_space<vmem>>, vector<1x64x64xf32>
    %289 = vector.shape_cast %288 : vector<1x64x64xf32> to vector<64x64xf32>
    %cst_134 = arith.constant dense<0.000000e+00> : vector<2x64xf32>
    %290 = tpu.matmul %287, %289, %cst_134 {dimension_numbers = #tpu.dot_dimension_numbers<[1], [0], [0], [1], [0, 0, 1, 1], [], []>} : vector<2x64xf32>, vector<64x64xf32>, vector<2x64xf32> -> vector<2x64xf32>
    %291 = vector.extract_strided_slice %0 {offsets = [7, 0], sizes = [1, 64], strides = [1, 1]} : vector<16x64xf32> to vector<1x64xf32>
    %292 = vector.broadcast %291 : vector<1x64xf32> to vector<2x64xf32>
    %293 = arith.addf %290, %292 : vector<2x64xf32>
    %c8_135 = arith.constant 8 : index
    %c0_136 = arith.constant 0 : index
    %c0_137 = arith.constant 0 : index
    %294 = vector.load %arg2[%c8_135, %c0_136, %c0_137] : memref<12x64x64xf32, #tpu.memory_space<vmem>>, vector<1x64x64xf32>
    %295 = vector.shape_cast %294 : vector<1x64x64xf32> to vector<64x64xf32>
    %cst_138 = arith.constant dense<0.000000e+00> : vector<2x64xf32>
    %296 = tpu.matmul %287, %295, %cst_138 {dimension_numbers = #tpu.dot_dimension_numbers<[1], [0], [0], [1], [0, 0, 1, 1], [], []>} : vector<2x64xf32>, vector<64x64xf32>, vector<2x64xf32> -> vector<2x64xf32>
    %297 = vector.extract_strided_slice %0 {offsets = [8, 0], sizes = [1, 64], strides = [1, 1]} : vector<16x64xf32> to vector<1x64xf32>
    %298 = vector.broadcast %297 : vector<1x64xf32> to vector<2x64xf32>
    %299 = arith.addf %296, %298 : vector<2x64xf32>
    %c9_139 = arith.constant 9 : index
    %c0_140 = arith.constant 0 : index
    %c0_141 = arith.constant 0 : index
    %300 = vector.load %arg2[%c9_139, %c0_140, %c0_141] : memref<12x64x64xf32, #tpu.memory_space<vmem>>, vector<1x64x64xf32>
    %301 = vector.shape_cast %300 : vector<1x64x64xf32> to vector<64x64xf32>
    %cst_142 = arith.constant dense<0.000000e+00> : vector<2x64xf32>
    %302 = tpu.matmul %287, %301, %cst_142 {dimension_numbers = #tpu.dot_dimension_numbers<[1], [0], [0], [1], [0, 0, 1, 1], [], []>} : vector<2x64xf32>, vector<64x64xf32>, vector<2x64xf32> -> vector<2x64xf32>
    %303 = vector.extract_strided_slice %0 {offsets = [9, 0], sizes = [1, 64], strides = [1, 1]} : vector<16x64xf32> to vector<1x64xf32>
    %304 = vector.broadcast %303 : vector<1x64xf32> to vector<2x64xf32>
    %305 = arith.addf %302, %304 : vector<2x64xf32>
    %c4_i32 = arith.constant 4 : i32
    %c4_143 = arith.constant 4 : index
    %c0_144 = arith.constant 0 : index
    %c0_145 = arith.constant 0 : index
    %306 = vector.load %arg2[%c4_143, %c0_144, %c0_145] : memref<12x64x64xf32, #tpu.memory_space<vmem>>, vector<1x64x64xf32>
    %307 = vector.shape_cast %306 : vector<1x64x64xf32> to vector<64x64xf32>
    %cst_146 = arith.constant dense<0.000000e+00> : vector<2x64xf32>
    %308 = tpu.matmul %279, %307, %cst_146 {dimension_numbers = #tpu.dot_dimension_numbers<[1], [0], [0], [1], [0, 0, 1, 1], [], []>} : vector<2x64xf32>, vector<64x64xf32>, vector<2x64xf32> -> vector<2x64xf32>
    %c5_147 = arith.constant 5 : index
    %c0_148 = arith.constant 0 : index
    %c0_149 = arith.constant 0 : index
    %309 = vector.load %arg2[%c5_147, %c0_148, %c0_149] : memref<12x64x64xf32, #tpu.memory_space<vmem>>, vector<1x64x64xf32>
    %310 = vector.shape_cast %309 : vector<1x64x64xf32> to vector<64x64xf32>
    %cst_150 = arith.constant dense<0.000000e+00> : vector<2x64xf32>
    %311 = tpu.matmul %279, %310, %cst_150 {dimension_numbers = #tpu.dot_dimension_numbers<[1], [0], [0], [1], [0, 0, 1, 1], [], []>} : vector<2x64xf32>, vector<64x64xf32>, vector<2x64xf32> -> vector<2x64xf32>
    %c6_151 = arith.constant 6 : index
    %c0_152 = arith.constant 0 : index
    %c0_153 = arith.constant 0 : index
    %312 = vector.load %arg2[%c6_151, %c0_152, %c0_153] : memref<12x64x64xf32, #tpu.memory_space<vmem>>, vector<1x64x64xf32>
    %313 = vector.shape_cast %312 : vector<1x64x64xf32> to vector<64x64xf32>
    %cst_154 = arith.constant dense<0.000000e+00> : vector<2x64xf32>
    %314 = tpu.matmul %279, %313, %cst_154 {dimension_numbers = #tpu.dot_dimension_numbers<[1], [0], [0], [1], [0, 0, 1, 1], [], []>} : vector<2x64xf32>, vector<64x64xf32>, vector<2x64xf32> -> vector<2x64xf32>
    %315 = arith.addf %39, %293 : vector<2x64xf32>
    %316 = arith.addf %315, %308 : vector<2x64xf32>
    %317 = arith.negf %316 : vector<2x64xf32>
    %318 = math.exp %317 : vector<2x64xf32>
    %cst_155 = arith.constant 1.000000e+00 : f32
    %319 = vector.broadcast %cst_155 : f32 to vector<2x64xf32>
    %320 = arith.addf %319, %318 : vector<2x64xf32>
    %321 = arith.divf %319, %320 : vector<2x64xf32>
    %322 = arith.addf %45, %299 : vector<2x64xf32>
    %323 = arith.addf %322, %311 : vector<2x64xf32>
    %324 = arith.negf %323 : vector<2x64xf32>
    %325 = math.exp %324 : vector<2x64xf32>
    %cst_156 = arith.constant 1.000000e+00 : f32
    %326 = vector.broadcast %cst_156 : f32 to vector<2x64xf32>
    %327 = arith.addf %326, %325 : vector<2x64xf32>
    %328 = arith.divf %326, %327 : vector<2x64xf32>
    %329 = arith.addf %51, %305 : vector<2x64xf32>
    %330 = vector.extract_strided_slice %0 {offsets = [6, 0], sizes = [1, 64], strides = [1, 1]} : vector<16x64xf32> to vector<1x64xf32>
    %331 = vector.broadcast %330 : vector<1x64xf32> to vector<2x64xf32>
    %332 = arith.addf %314, %331 : vector<2x64xf32>
    %333 = arith.mulf %321, %332 : vector<2x64xf32>
    %334 = arith.addf %329, %333 : vector<2x64xf32>
    %335 = math.tanh %334 : vector<2x64xf32>
    %cst_157 = arith.constant 1.000000e+00 : f32
    %336 = vector.broadcast %cst_157 : f32 to vector<2x64xf32>
    %337 = arith.subf %336, %328 : vector<2x64xf32>
    %338 = arith.mulf %337, %335 : vector<2x64xf32>
    %339 = arith.mulf %328, %279 : vector<2x64xf32>
    %340 = arith.addf %338, %339 : vector<2x64xf32>
    %c10_158 = arith.constant 10 : index
    %c0_159 = arith.constant 0 : index
    %c0_160 = arith.constant 0 : index
    %341 = vector.load %arg2[%c10_158, %c0_159, %c0_160] : memref<12x64x64xf32, #tpu.memory_space<vmem>>, vector<1x64x64xf32>
    %342 = vector.shape_cast %341 : vector<1x64x64xf32> to vector<64x64xf32>
    %cst_161 = arith.constant dense<0.000000e+00> : vector<2x64xf32>
    %343 = tpu.matmul %340, %342, %cst_161 {dimension_numbers = #tpu.dot_dimension_numbers<[1], [0], [0], [1], [0, 0, 1, 1], [], []>} : vector<2x64xf32>, vector<64x64xf32>, vector<2x64xf32> -> vector<2x64xf32>
    %344 = vector.extract_strided_slice %0 {offsets = [13, 0], sizes = [1, 64], strides = [1, 1]} : vector<16x64xf32> to vector<1x64xf32>
    %345 = vector.broadcast %344 : vector<1x64xf32> to vector<2x64xf32>
    %346 = arith.addf %343, %345 : vector<2x64xf32>
    %cst_162 = arith.constant 0.000000e+00 : f32
    %347 = vector.broadcast %cst_162 : f32 to vector<2x64xf32>
    %348 = arith.maximumf %346, %347 : vector<2x64xf32>
    %c7_163 = arith.constant 7 : index
    %c0_164 = arith.constant 0 : index
    %c0_165 = arith.constant 0 : index
    %349 = vector.load %arg2[%c7_163, %c0_164, %c0_165] : memref<12x64x64xf32, #tpu.memory_space<vmem>>, vector<1x64x64xf32>
    %350 = vector.shape_cast %349 : vector<1x64x64xf32> to vector<64x64xf32>
    %cst_166 = arith.constant dense<0.000000e+00> : vector<2x64xf32>
    %351 = tpu.matmul %348, %350, %cst_166 {dimension_numbers = #tpu.dot_dimension_numbers<[1], [0], [0], [1], [0, 0, 1, 1], [], []>} : vector<2x64xf32>, vector<64x64xf32>, vector<2x64xf32> -> vector<2x64xf32>
    %352 = vector.extract_strided_slice %0 {offsets = [7, 0], sizes = [1, 64], strides = [1, 1]} : vector<16x64xf32> to vector<1x64xf32>
    %353 = vector.broadcast %352 : vector<1x64xf32> to vector<2x64xf32>
    %354 = arith.addf %351, %353 : vector<2x64xf32>
    %c8_167 = arith.constant 8 : index
    %c0_168 = arith.constant 0 : index
    %c0_169 = arith.constant 0 : index
    %355 = vector.load %arg2[%c8_167, %c0_168, %c0_169] : memref<12x64x64xf32, #tpu.memory_space<vmem>>, vector<1x64x64xf32>
    %356 = vector.shape_cast %355 : vector<1x64x64xf32> to vector<64x64xf32>
    %cst_170 = arith.constant dense<0.000000e+00> : vector<2x64xf32>
    %357 = tpu.matmul %348, %356, %cst_170 {dimension_numbers = #tpu.dot_dimension_numbers<[1], [0], [0], [1], [0, 0, 1, 1], [], []>} : vector<2x64xf32>, vector<64x64xf32>, vector<2x64xf32> -> vector<2x64xf32>
    %358 = vector.extract_strided_slice %0 {offsets = [8, 0], sizes = [1, 64], strides = [1, 1]} : vector<16x64xf32> to vector<1x64xf32>
    %359 = vector.broadcast %358 : vector<1x64xf32> to vector<2x64xf32>
    %360 = arith.addf %357, %359 : vector<2x64xf32>
    %c9_171 = arith.constant 9 : index
    %c0_172 = arith.constant 0 : index
    %c0_173 = arith.constant 0 : index
    %361 = vector.load %arg2[%c9_171, %c0_172, %c0_173] : memref<12x64x64xf32, #tpu.memory_space<vmem>>, vector<1x64x64xf32>
    %362 = vector.shape_cast %361 : vector<1x64x64xf32> to vector<64x64xf32>
    %cst_174 = arith.constant dense<0.000000e+00> : vector<2x64xf32>
    %363 = tpu.matmul %348, %362, %cst_174 {dimension_numbers = #tpu.dot_dimension_numbers<[1], [0], [0], [1], [0, 0, 1, 1], [], []>} : vector<2x64xf32>, vector<64x64xf32>, vector<2x64xf32> -> vector<2x64xf32>
    %364 = vector.extract_strided_slice %0 {offsets = [9, 0], sizes = [1, 64], strides = [1, 1]} : vector<16x64xf32> to vector<1x64xf32>
    %365 = vector.broadcast %364 : vector<1x64xf32> to vector<2x64xf32>
    %366 = arith.addf %363, %365 : vector<2x64xf32>
    %c11 = arith.constant 11 : index
    %c0_175 = arith.constant 0 : index
    %c0_176 = arith.constant 0 : index
    %367 = vector.load %arg2[%c11, %c0_175, %c0_176] : memref<12x64x64xf32, #tpu.memory_space<vmem>>, vector<1x64x64xf32>
    %368 = vector.shape_cast %367 : vector<1x64x64xf32> to vector<64x64xf32>
    %cst_177 = arith.constant dense<0.000000e+00> : vector<2x64xf32>
    %369 = tpu.matmul %348, %368, %cst_177 {dimension_numbers = #tpu.dot_dimension_numbers<[1], [0], [0], [1], [0, 0, 1, 1], [], []>} : vector<2x64xf32>, vector<64x64xf32>, vector<2x64xf32> -> vector<2x64xf32>
    %370 = vector.extract_strided_slice %0 {offsets = [14, 0], sizes = [1, 64], strides = [1, 1]} : vector<16x64xf32> to vector<1x64xf32>
    %371 = vector.broadcast %370 : vector<1x64xf32> to vector<2x64xf32>
    %372 = arith.addf %369, %371 : vector<2x64xf32>
    %373 = vector.extract_strided_slice %372 {offsets = [0, 0], sizes = [2, 6], strides = [1, 1]} : vector<2x64xf32> to vector<2x6xf32>
    %c0_178 = arith.constant 0 : index
    %c0_179 = arith.constant 0 : index
    %374 = vector.load %arg4[%c0_178, %c0_179] : memref<2x6xf32, #tpu.memory_space<vmem>>, vector<2x6xf32>
    tpu.vector_store %arg4[%c0_178, %c0_179], %373 {strides = array<i32>} : memref<2x6xf32, #tpu.memory_space<vmem>>, vector<2x6xf32>,
    return
  }
  func.func @transform_0(%arg0: i32) -> (i32, i32) {
    %c0_i32 = arith.constant 0 : i32
    %c0_i32_0 = arith.constant 0 : i32
    return %arg0, %c0_i32 : i32, i32
  }
  func.func @transform_1(%arg0: i32) -> (i32, i32, i32) {
    %c0_i32 = arith.constant 0 : i32
    %c0_i32_0 = arith.constant 0 : i32
    %c0_i32_1 = arith.constant 0 : i32
    %c0_i32_2 = arith.constant 0 : i32
    return %c0_i32, %c0_i32_0, %c0_i32_1 : i32, i32, i32
  }
  func.func @transform_2(%arg0: i32) -> (i32, i32) {
    %c0_i32 = arith.constant 0 : i32
    %c0_i32_0 = arith.constant 0 : i32
    %c0_i32_1 = arith.constant 0 : i32
    return %c0_i32, %c0_i32_0 : i32, i32
  }
  func.func @transform_3(%arg0: i32) -> (i32, i32) {
    %c0_i32 = arith.constant 0 : i32
    %c0_i32_0 = arith.constant 0 : i32
    return %arg0, %c0_i32 : i32, i32
  }
}

</mosaic_0001>

<bundles_post_ra>
// kernel: tpu_custom_call.1
= control target key start
LH: loop header
LB: loop body
LE: loop exit
PB: predicated region body
PF: predicated region fallthrough
CT: control target
= control target key end

     0   :  { %8 = vsyncpa [#allocation3], 0  ;;  %s5381_s0 = inlined_call_operand.hbm [shape: f32[2,64], index: 0, kind: input, shape index: {}]   ;;  %s5382_s1 = inlined_call_operand.hbm [shape: f32[12,64,64], index: 1, kind: input, shape index: {}]   ;;  %s5383_s2 = inlined_call_operand.hbm [shape: f32[16,64], index: 2, kind: input, shape index: {}]   ;;  %s5384_s3 = inlined_call_operand.hbm [shape: f32[2,6], index: 3, kind: output, shape index: {}]  }
   0x1   :  { %9 = vsyncpa [#allocation6], 0 }
   0x2   :  { %10 = vsyncpa [#allocation4], 0  ;;  %s4727_s12 = smov [#allocation5]   ;;  %s4633_s16 = scalar_lea.hbm %s5382_s1, 12288 }
   0x3   :  { %s26_s13 = sshll.u32 %s4727_s12, 4  ;;  %p4634_p0 = scmp.ne.s32.totalorder %s5382_s1, %s4633_s16  ;;  %s27_s13 = int_to_ptr.vmem [resolvable:$true] %s26_s13 }
   0x4   :  { %p4637_p1 = scmp.lt.u32.totalorder %s4633_s16, %s5382_s1 }
   0x6   :  { %p4639_p2 = pnand %p4637_p1, %p4634_p0 }
   0x8   :  { %4642 = shalt.err (!%p4639_p2)
}
   0x9   :  { %s4643_s21 = scalar_lea.vmem %s27_s13, 12288  ;;  %p4648_p4 = scmp.lt.s32.totalorder %s27_s13, %s27_s13 }
   0xa   :  { %p4644_p3 = scmp.ne.s32.totalorder %s27_s13, %s4643_s21  ;;  %p4649_p5 = scmp.lt.s32.totalorder %s4643_s21, %s4643_s21 }
   0xc   :  { %p4650_p6 = por %p4649_p5, %p4648_p4 }
   0xe   :  { %p4651_p7 = pnand %p4650_p6, %p4644_p3 }
  0x10   :  { %4654 = shalt.err (!%p4651_p7)
}
  0x11   :  { %s4728_s22 = smov 128   ;;  %s4729_s23 = smov 8  }
  0x12   :  { %32 = dma.hbm_to_vmem [thread:$0]  %s5382_s1, 12288, %s27_s13, [#allocation6], %s4728_s22, %s4728_s22, %s4729_s23  }
  0x13   :  { %s4730_s26 = smov [#allocation2]   ;;  %s4731_s28 = smov [#allocation7]  }
  0x14   :  { %s17_s27 = sshll.u32 %s4730_s26, 4  ;;  %s38_s29 = sshll.u32 %s4731_s28, 4  ;;  %s18_s27 = int_to_ptr.vmem [resolvable:$true] %s17_s27  ;;  %s39_s29 = int_to_ptr.vmem [resolvable:$true] %s38_s29 }
  0x15   :  { %s4655_s5 = scalar_lea.hbm %s5381_s0, 32 }
  0x16   :  { %p4656_p8 = scmp.ne.s32.totalorder %s5381_s0, %s4655_s5  ;;  %p4659_p9 = scmp.lt.u32.totalorder %s4655_s5, %s5381_s0 }
  0x18   :  { %p4661_p10 = pnand %p4659_p9, %p4656_p8 }
  0x1a   :  { %4664 = shalt.err (!%p4661_p10)
}
  0x1b   :  { %s4665_s1 = scalar_lea.vmem %s18_s27, 32  ;;  %p4670_p12 = scmp.lt.s32.totalorder %s18_s27, %s18_s27 }
  0x1c   :  { %p4666_p11 = scmp.ne.s32.totalorder %s18_s27, %s4665_s1  ;;  %p4671_p13 = scmp.lt.s32.totalorder %s4665_s1, %s4665_s1 }
  0x1e   :  { %p4672_p0 = por %p4671_p13, %p4670_p12 }
  0x20   :  { %p4673_p1 = pnand %p4672_p0, %p4666_p11 }
  0x22   :  { %4676 = shalt.err (!%p4673_p1)
}
  0x23   :  { %20 = dma.hbm_to_vmem [thread:$0]  %s5381_s0, 32, %s18_s27, [#allocation3]  }
  0x24   :  { %s4677_s14 = scalar_lea.hbm %s5383_s2, 256 }
  0x25   :  { %p4678_p2 = scmp.ne.s32.totalorder %s5383_s2, %s4677_s14  ;;  %p4681_p3 = scmp.lt.u32.totalorder %s4677_s14, %s5383_s2 }
  0x27   :  { %p4683_p4 = pnand %p4681_p3, %p4678_p2 }
  0x29   :  { %4686 = shalt.err (!%p4683_p4)
}
  0x2a   :  { %s4687_s19 = scalar_lea.vmem %s39_s29, 256  ;;  %p4692_p6 = scmp.lt.s32.totalorder %s39_s29, %s39_s29 }
  0x2b   :  { %p4688_p5 = scmp.ne.s32.totalorder %s39_s29, %s4687_s19  ;;  %p4693_p7 = scmp.lt.s32.totalorder %s4687_s19, %s4687_s19 }
  0x2d   :  { %p4694_p8 = por %p4693_p7, %p4692_p6 }
  0x2f   :  { %p4695_p9 = pnand %p4694_p8, %p4688_p5 }
  0x31   :  { %4698 = shalt.err (!%p4695_p9)
}
  0x32   :  { %44 = dma.hbm_to_vmem [thread:$0]  %s5383_s2, 256, %s39_s29, [#allocation6], %s4728_s22, %s4728_s22, %s4729_s23  }
  0x33   :  { %4721 = dma.done.wait [#allocation3], 32  }
  0x34   :  { %4722 = vsyncadd [#allocation3], 4294967264 }
  0x35   :  { %4723 = dma.done.wait [#allocation6], 12544  }
  0x36   :  { %4724 = vsyncadd [#allocation6], 4294954752  ;;  %v4732_v0 = vmov 0.0|0.0   ;;  %vm4733_vm0 = vmmov 0   ;;  %v4734_v1 = vmov 0.0   ;;  %v57_v2 = vld [vmem:[#allocation5] sm:$0xff]  ;;  %v65_v15 = vlaneseq }
  0x37   :  { %4095 = vmatprep.subr.bf16.mxu0 %v4732_v0  ;;  %3408 = vmatprep.mubr.msk.f32.mxu0 %vm4733_vm0, %v4734_v1  ;;  %v58_v3 = vld [vmem:[#allocation5 + $0x8] sm:$0xff]  ;;  %v59_v4 = vld [vmem:[#allocation5 + $0x10] sm:$0xff]  ;;  %v60_v6 = vld [vmem:[#allocation5 + $0x18] sm:$0xff]  ;;  %vm69_vm1 = vcmask 523264   ;;  %vm144_vm2 = vcmask 517120   ;;  %s4735_s2 = smov [#allocation8]  }
  0x38   :  { %4107 = vmatprep.subr.bf16.mxu1 %v4732_v0  ;;  %3427 = vmatprep.mubr.msk.f32.mxu1 %vm4733_vm0, %v4734_v1  ;;  %v4096_v5 = vpack.c.bf16 %v58_v3, %v57_v2  ;;  %v4099_v7 = vpack.c.bf16 %v60_v6, %v59_v4  ;;  %v61_v8 = vld [vmem:[#allocation5 + $0x20] sm:$0xff]  ;;  %v62_v9 = vld [vmem:[#allocation5 + $0x28] sm:$0xff]  ;;  %v63_v11 = vld [vmem:[#allocation5 + $0x30] sm:$0xff]  ;;  %v4811_v16 = vshrl.u32 %v65_v15, 7  ;;  %s3002_s21 = sshll.u32 %s4735_s2, 4  ;;  %vm2994_vm3 = vcmask 41984   ;;  %s3003_s21 = int_to_ptr.vmem [resolvable:$true] %s3002_s21 }
  0x39   :  { %v4102_v10 = vpack.c.bf16 %v62_v9, %v61_v8  ;;  %v64_v12 = vld [vmem:[#allocation5 + $0x38] sm:$0xff]  ;;  %v4814_v18 = vld [vmem:[#allocation7] sm:$0xff]  ;;  %v171_v31 = vld [vmem:[#allocation5 + $0x48] sm:$0xff]  ;;  %s4699_s22 = scalar_lea.vmem %s3003_s21, 32  ;;  %p4704_p11 = scmp.lt.s32.totalorder %s3003_s21, %s3003_s21 }
  0x3a   :  { %4097 = vmatpush3.bf16.msra.mxu0 %v4096_v5  ;;  %v4105_v13 = vpack.c.bf16 %v64_v12, %v63_v11  ;;  %v56_v14 = vld [vmem:[#allocation2] sm:$0x3]  ;;  %v67_v17 = vsub.s32 0, %v4811_v16  ;;  %v170_v30 = vld [vmem:[#allocation5 + $0x40] sm:$0xff]  ;;  %v257_v34 = vld [vmem:[#allocation5 + $0x88] sm:$0xff]  ;;  %v161_v57 = vsub.s32 1, %v4811_v16  ;;  %p4700_p10 = scmp.ne.s32.totalorder %s3003_s21, %s4699_s22  ;;  %p4705_p12 = scmp.lt.s32.totalorder %s4699_s22, %s4699_s22 }
  0x3b   :  { %4098 = vmatprep.subr.bf16.mxu0 %v4732_v0  ;;  %v256_v32 = vld [vmem:[#allocation5 + $0x80] sm:$0xff]  ;;  %v4108_v33 = vpack.c.bf16 %v171_v31, %v170_v30  ;;  %v172_v36 = vld [vmem:[#allocation5 + $0x50] sm:$0xff]  ;;  %v173_v37 = vld [vmem:[#allocation5 + $0x58] sm:$0xff]  ;;  %v166_v58 = vsub.s32 2, %v4811_v16 }
  0x3c   :  { %v68_v19 = vrot.slane %v4814_v18, %v67_v17  ;;  %v4120_v35 = vpack.c.bf16 %v257_v34, %v256_v32  ;;  %v258_v38 = vld [vmem:[#allocation5 + $0x90] sm:$0xff]  ;;  %v4111_v39 = vpack.c.bf16 %v173_v37, %v172_v36  ;;  %v259_v40 = vld [vmem:[#allocation5 + $0x98] sm:$0xff]  ;;  %v174_v42 = vld [vmem:[#allocation5 + $0x60] sm:$0xff]  ;;  %v162_v59 = vrot.slane %v4814_v18, %v161_v57  ;;  %p4706_p13 = por %p4705_p12, %p4704_p11 }
  0x3d   :  { %4109 = vmatpush3.bf16.msra.mxu1 %v4108_v33  ;;  %v4123_v41 = vpack.c.bf16 %v259_v40, %v258_v38  ;;  %v175_v43 = vld [vmem:[#allocation5 + $0x68] sm:$0xff]  ;;  %v260_v44 = vld [vmem:[#allocation5 + $0xa0] sm:$0xff]  ;;  %v176_v48 = vld [vmem:[#allocation5 + $0x70] sm:$0xff]  ;;  %v167_v62 = vrot.slane %v4814_v18, %v166_v58 }
  0x3e   :  { %4100 = vmatpush3.bf16.msra.mxu0 %v4099_v7  ;;  %4110 = vmatprep.subr.bf16.mxu1 %v4732_v0  ;;  %v4114_v45 = vpack.c.bf16 %v175_v43, %v174_v42  ;;  %v261_v46 = vld [vmem:[#allocation5 + $0xa8] sm:$0xff]  ;;  %v177_v49 = vld [vmem:[#allocation5 + $0x78] sm:$0xff]  ;;  %v262_v50 = vld [vmem:[#allocation5 + $0xb0] sm:$0xff]  ;;  %p4707_p0 = pnand %p4706_p13, %p4700_p10 }
  0x3f   :  { %4101 = vmatprep.subr.bf16.mxu0 %v4732_v0  ;;  %v4126_v47 = vpack.c.bf16 %v261_v46, %v260_v44  ;;  %v4117_v51 = vpack.c.bf16 %v177_v49, %v176_v48  ;;  %v263_v52 = vld [vmem:[#allocation5 + $0xb8] sm:$0xff]  ;;  %v339_v61 = vld [vmem:[#allocation5 + $0xc0] sm:$0xff]  ;;  %v340_v2 = vld [vmem:[#allocation5 + $0xc8] sm:$0xff] }
  0x40   :  { %v4129_v53 = vpack.c.bf16 %v263_v52, %v262_v50  ;;  %v434_v3 = vld [vmem:[#allocation5 + $0x100] sm:$0xff]  ;;  %v435_v4 = vld [vmem:[#allocation5 + $0x108] sm:$0xff]  ;;  %v4132_v6 = vpack.c.bf16 %v340_v2, %v339_v61  ;;  %v341_v8 = vld [vmem:[#allocation5 + $0xd0] sm:$0xff] }
  0x41   :  { %4112 = vmatpush3.bf16.msra.mxu1 %v4111_v39  ;;  %v4835_v7 = vpack.c.bf16 %v435_v4, %v434_v3  ;;  %v436_v11 = vld [vmem:[#allocation5 + $0x110] sm:$0xff]  ;;  %v437_v12 = vld [vmem:[#allocation5 + $0x118] sm:$0xff]  ;;  %v343_v15 = vld [vmem:[#allocation5 + $0xe0] sm:$0xff] }
  0x42   :  { %4103 = vmatpush3.bf16.msra.mxu0 %v4102_v10  ;;  %4113 = vmatprep.subr.bf16.mxu1 %v4732_v0  ;;  %v342_v10 = vld [vmem:[#allocation5 + $0xd8] sm:$0xff]  ;;  %v513_v30 = vld [vmem:[#allocation5 + $0x140] sm:$0xff]  ;;  %v514_v31 = vld [vmem:[#allocation5 + $0x148] sm:$0xff] }
  0x43   :  { %4104 = vmatprep.subr.bf16.mxu0 %v4732_v0  ;;  %v592_v32 = vld [vmem:[#allocation5 + $0x180] sm:$0xff]  ;;  %v593_v33 = vld [vmem:[#allocation5 + $0x188] sm:$0xff]  ;;  %v4863_v34 = vpack.c.bf16 %v514_v31, %v513_v30  ;;  %v515_v36 = vld [vmem:[#allocation5 + $0x150] sm:$0xff] }
  0x44   :  { %v516_v37 = vld [vmem:[#allocation5 + $0x158] sm:$0xff]  ;;  %v594_v38 = vld [vmem:[#allocation5 + $0x190] sm:$0xff]  ;;  %v517_v42 = vld [vmem:[#allocation5 + $0x160] sm:$0xff] }
  0x45   :  { %4115 = vmatpush3.bf16.msra.mxu1 %v4114_v45  ;;  %v595_v39 = vld [vmem:[#allocation5 + $0x198] sm:$0xff]  ;;  %v4875_v40 = vpack.c.bf16 %v516_v37, %v515_v36  ;;  %v518_v43 = vld [vmem:[#allocation5 + $0x168] sm:$0xff]  ;;  %v596_v44 = vld [vmem:[#allocation5 + $0x1a0] sm:$0xff] }
  0x46   :  { %4106 = vmatpush3.bf16.msra.mxu0 %v4105_v13  ;;  %4116 = vmatprep.subr.bf16.mxu1 %v4732_v0  ;;  %v4135_v13 = vpack.c.bf16 %v342_v10, %v341_v8  ;;  %v597_v45 = vld [vmem:[#allocation5 + $0x1a8] sm:$0xff]  ;;  %v4887_v46 = vpack.c.bf16 %v518_v43, %v517_v42  ;;  %v519_v48 = vld [vmem:[#allocation5 + $0x170] sm:$0xff]  ;;  %v520_v49 = vld [vmem:[#allocation5 + $0x178] sm:$0xff]  ;;  %v266_v42 = vsub.s32 4, %v4811_v16 }
  0x47   :  { %4119 = vmatprep.subr.bf16.mxu0 %v4732_v0  ;;  %v598_v50 = vld [vmem:[#allocation5 + $0x1b0] sm:$0xff]  ;;  %v4895_v52 = vpack.c.bf16 %v520_v49, %v519_v48  ;;  %v706_v4 = vld [vmem:[#allocation5 + $0x2b8] sm:$0xff]  ;;  %v787_v8 = vld [vmem:[#allocation5 + $0x1c8] sm:$0xff] }
  0x48   :  { %v705_v3 = vld [vmem:[#allocation5 + $0x2b0] sm:$0xff] }
  0x49   :  { %3409 = vmatmul.mubr.msk.f32.vlgmr.msra.gmra.mrb[0].mxu0 %vm69_vm1, %v56_v14  ;;  %4118 = vmatpush3.bf16.msra.mxu1 %v4117_v51  ;;  %v4844_v14 = vpack.c.bf16 %v437_v12, %v436_v11  ;;  %v599_v51 = vld [vmem:[#allocation5 + $0x1b8] sm:$0xff]  ;;  %v788_v11 = vld [vmem:[#allocation5 + $0x1d0] sm:$0xff] }
  0x4a   :  { %3446 = vmatprep.mubr.msk.f32.mxu0 %vm4733_vm0, %v4734_v1  ;;  %4121 = vmatpush3.bf16.msra.mxu0 %v4120_v35  ;;  %v4865_v35 = vpack.c.bf16 %v593_v33, %v592_v32  ;;  %v789_v12 = vld [vmem:[#allocation5 + $0x1d8] sm:$0xff] }
  0x4b   :  { %4122 = vmatprep.subr.bf16.mxu0 %v4732_v0  ;;  %4131 = vmatprep.subr.bf16.mxu1 %v4732_v0 }
  0x4e   :  { %4124 = vmatpush3.bf16.msra.mxu0 %v4123_v41  ;;  %v4877_v41 = vpack.c.bf16 %v595_v39, %v594_v38 }
  0x4f   :  { %4125 = vmatprep.subr.bf16.mxu0 %v4732_v0 }
  0x52   :  { %4127 = vmatpush3.bf16.msra.mxu0 %v4126_v47  ;;  %v4889_v47 = vpack.c.bf16 %v597_v45, %v596_v44  ;;  %v267_v44 = vrot.slane %v4814_v18, %v266_v42 }
  0x53   :  { %4128 = vmatprep.subr.bf16.mxu0 %v4732_v0 }
  0x56   :  { %4130 = vmatpush3.bf16.msra.mxu0 %v4129_v53  ;;  %v4897_v53 = vpack.c.bf16 %v599_v51, %v598_v50 }
  0x57   :  { %4143 = vmatprep.subr.bf16.mxu0 %v4732_v0 }
 0x11c   :  { %v139_v20 = vpop.f32.mrb[0].mxu0 }
 0x11d   :  { %v140_v21 = vadd.f32 %v139_v20, %v68_v19  ;;  %v3410_v22 = vpop.f32.mrb[1].mxu0  ;;  %v344_v19 = vld [vmem:[#allocation5 + $0xe8] sm:$0xff]  ;;  %v438_v20 = vld [vmem:[#allocation5 + $0x120] sm:$0xff] }
 0x11e   :  { %v4138_v22 = vpack.c.bf16 %v344_v19, %v343_v15  ;;  %v790_v15 = vld [vmem:[#allocation5 + $0x1e0] sm:$0xff]  ;;  %v791_v19 = vld [vmem:[#allocation5 + $0x1e8] sm:$0xff] }
 0x11f   :  { %v143_v23 = vmax.f32 %v140_v21, 0.0  ;;  %v439_v21 = vld [vmem:[#allocation5 + $0x128] sm:$0xff] }
 0x121   :  { %v145_v24 = vsel %vm144_vm2, %v143_v23, 0.0 }
 0x122   :  { %146 = vadd.xlane.f32.xlu0 %v145_v24  ;;  %v345_v24 = vld [vmem:[#allocation5 + $0xf0] sm:$0xff] }
 0x1af   :  { %v147_v25 = vpop.xlane.xlu0 %146 }
 0x1b0   :  { %v149_v26 = vmul.f32 0.015625, %v147_v25  ;;  %v346_v25 = vld [vmem:[#allocation5 + $0xf8] sm:$0xff] }
 0x1b2   :  { %v150_v27 = vsub.f32 %v143_v23, %v149_v26  ;;  %v4853_v23 = vpack.c.bf16 %v439_v21, %v438_v20  ;;  %v440_v26 = vld [vmem:[#allocation5 + $0x130] sm:$0xff]  ;;  %v4936_v20 = vpack.c.bf16 %v791_v19, %v790_v15 }
 0x1b4   :  { %v151_v28 = vmul.f32 %v150_v27, %v150_v27 }
 0x1b6   :  { %v152_v29 = vsel %vm144_vm2, %v151_v28, 0.0  ;;  %v4141_v28 = vpack.c.bf16 %v346_v25, %v345_v24 }
 0x1b7   :  { %153 = vadd.xlane.f32.xlu0 %v152_v29 }
 0x244   :  { %v154_v54 = vpop.xlane.xlu0 %153 }
 0x245   :  { %v155_v55 = vmul.f32 0.015625, %v154_v54  ;;  %v699_v54 = vld [vmem:[#allocation5 + $0x280] sm:$0xff] }
 0x247   :  { %v156_v56 = vadd.f32 1e-05, %v155_v55  ;;  %v700_v55 = vld [vmem:[#allocation5 + $0x288] sm:$0xff] }
 0x249   :  { %4580 = vrsqrt.f32 %v156_v56  ;;  %v4913_v56 = vpack.c.bf16 %v700_v55, %v699_v54 }
 0x253   :  { %v4581_v60 = vpop.eup %4580 }
 0x254   :  { %v158_v63 = vmul.f32 %v4581_v60, %v150_v27  ;;  %v441_v27 = vld [vmem:[#allocation5 + $0x138] sm:$0xff] }
 0x255   :  { %v4858_v29 = vpack.c.bf16 %v441_v27, %v440_v26  ;;  %v702_v60 = vld [vmem:[#allocation5 + $0x298] sm:$0xff]  ;;  %v180_v26 = vsub.s32 3, %v4811_v16 }
 0x256   :  { %v163_v5 = vmul.f32 %v162_v59, %v158_v63  ;;  %v701_v59 = vld [vmem:[#allocation5 + $0x290] sm:$0xff]  ;;  %v704_v63 = vld [vmem:[#allocation5 + $0x2a8] sm:$0xff] }
 0x257   :  { %v4917_v61 = vpack.c.bf16 %v702_v60, %v701_v59  ;;  %v181_v27 = vrot.slane %v4814_v18, %v180_v26 }
 0x258   :  { %v4837_v9 = vadd.f32 %v167_v62, %v163_v5  ;;  %v703_v62 = vld [vmem:[#allocation5 + $0x2a0] sm:$0xff]  ;;  %v4925_v5 = vpack.c.bf16 %v706_v4, %v705_v3  ;;  %v619_v3 = vsub.s32 6, %v4811_v16 }
 0x259   :  { %v4921_v2 = vpack.c.bf16 %v704_v63, %v703_v62  ;;  %v349_v62 = vsub.s32 5, %v4811_v16 }
 0x25a   :  { %3428 = vmatmul.mubr.msk.f32.vlgmr.msra.gmra.mrb[0].mxu1 %vm69_vm1, %v4837_v9  ;;  %3447 = vmatmul.mubr.msk.f32.vlgmr.msra.gmra.mrb[2].mxu0 %vm69_vm1, %v4837_v9 }
 0x25b   :  { %4133 = vmatpush3.bf16.msra.mxu1 %v4132_v6  ;;  %4145 = vmatpush3.bf16.msra.mxu0 %v4835_v7  ;;  %v786_v6 = vld [vmem:[#allocation5 + $0x1c0] sm:$0xff]  ;;  %v350_v4 = vrot.slane %v4814_v18, %v349_v62 }
 0x25c   :  { %4134 = vmatprep.subr.bf16.mxu1 %v4732_v0  ;;  %4146 = vmatprep.subr.bf16.mxu0 %v4732_v0  ;;  %v4929_v10 = vpack.c.bf16 %v787_v8, %v786_v6  ;;  %v4963_v6 = vrot.slane %v4814_v18, %v619_v3 }
 0x25d   :  { %3465 = vmatprep.mubr.msk.f32.mxu1 %vm4733_vm0, %v4734_v1  ;;  %3484 = vmatprep.mubr.msk.f32.mxu0 %vm4733_vm0, %v4734_v1 }
 0x25f   :  { %4136 = vmatpush3.bf16.msra.mxu1 %v4135_v13  ;;  %4148 = vmatpush3.bf16.msra.mxu0 %v4844_v14  ;;  %v4932_v13 = vpack.c.bf16 %v789_v12, %v788_v11 }
 0x260   :  { %4137 = vmatprep.subr.bf16.mxu1 %v4732_v0  ;;  %4149 = vmatprep.subr.bf16.mxu0 %v4732_v0 }
 0x263   :  { %4139 = vmatpush3.bf16.msra.mxu1 %v4138_v22  ;;  %4151 = vmatpush3.bf16.msra.mxu0 %v4853_v23 }
 0x264   :  { %4140 = vmatprep.subr.bf16.mxu1 %v4732_v0  ;;  %4152 = vmatprep.subr.bf16.mxu0 %v4732_v0 }
 0x267   :  { %4142 = vmatpush3.bf16.msra.mxu1 %v4141_v28  ;;  %4154 = vmatpush3.bf16.msra.mxu0 %v4858_v29  ;;  %v4943_v28 = vld [vmem:[#allocation7 + $0x8] sm:$0xff] }
 0x268   :  { %4155 = vmatprep.subr.bf16.mxu1 %v4732_v0  ;;  %4167 = vmatprep.subr.bf16.mxu0 %v4732_v0  ;;  %v424_v31 = vrot.slane %v4943_v28, %v166_v58  ;;  %v428_v48 = vrot.slane %v4943_v28, %v180_v26  ;;  %v432_v8 = vrot.slane %v4943_v28, %v266_v42  ;;  %v874_v42 = vld [vmem:[#allocation5 + $0x210] sm:$0xff] }
 0x26a   :  { %3466 = vmatmul.mubr.msk.f32.vlgmr.msra.gmra.mrb[2].mxu1 %vm69_vm1, %v4837_v9  ;;  %3485 = vmatmul.mubr.msk.f32.vlgmr.msra.gmra.mrb[4].mxu0 %vm69_vm1, %v4837_v9 }
 0x26b   :  { %4157 = vmatpush3.bf16.msra.mxu1 %v4863_v34  ;;  %4169 = vmatpush3.bf16.msra.mxu0 %v4865_v35 }
 0x26c   :  { %4158 = vmatprep.subr.bf16.mxu1 %v4732_v0  ;;  %4170 = vmatprep.subr.bf16.mxu0 %v4732_v0 }
 0x26d   :  { %3503 = vmatprep.mubr.msk.f32.mxu1 %vm4733_vm0, %v4734_v1  ;;  %3522 = vmatprep.mubr.msk.f32.mxu0 %vm4733_vm0, %v4734_v1 }
 0x26f   :  { %4160 = vmatpush3.bf16.msra.mxu1 %v4875_v40  ;;  %4172 = vmatpush3.bf16.msra.mxu0 %v4877_v41 }
 0x270   :  { %4161 = vmatprep.subr.bf16.mxu1 %v4732_v0  ;;  %4173 = vmatprep.subr.bf16.mxu0 %v4732_v0 }
 0x273   :  { %4163 = vmatpush3.bf16.msra.mxu1 %v4887_v46  ;;  %4175 = vmatpush3.bf16.msra.mxu0 %v4889_v47 }
 0x274   :  { %4164 = vmatprep.subr.bf16.mxu1 %v4732_v0  ;;  %4176 = vmatprep.subr.bf16.mxu0 %v4732_v0 }
 0x277   :  { %4166 = vmatpush3.bf16.msra.mxu1 %v4895_v52  ;;  %4178 = vmatpush3.bf16.msra.mxu0 %v4897_v53 }
 0x278   :  { %4179 = vmatprep.subr.bf16.mxu1 %v4732_v0  ;;  %4191 = vmatprep.subr.bf16.mxu0 %v4732_v0 }
 0x27a   :  { %3504 = vmatmul.mubr.msk.f32.vlgmr.msra.gmra.mrb[4].mxu1 %vm69_vm1, %v4837_v9  ;;  %3523 = vmatmul.mubr.msk.f32.vlgmr.msra.gmra.mrb[6].mxu0 %vm69_vm1, %v4837_v9 }
 0x27b   :  { %3541 = vmatprep.mubr.msk.f32.mxu1 %vm4733_vm0, %v4734_v1  ;;  %3560 = vmatprep.mubr.msk.f32.mxu0 %vm4733_vm0, %v4734_v1 }
 0x27c   :  { %4181 = vmatpush3.bf16.msra.mxu1 %v4913_v56  ;;  %4193 = vmatpush3.bf16.msra.mxu0 %v4929_v10 }
 0x27d   :  { %4182 = vmatprep.subr.bf16.mxu1 %v4732_v0  ;;  %4194 = vmatprep.subr.bf16.mxu0 %v4732_v0 }
 0x280   :  { %4184 = vmatpush3.bf16.msra.mxu1 %v4917_v61  ;;  %4196 = vmatpush3.bf16.msra.mxu0 %v4932_v13 }
 0x281   :  { %4185 = vmatprep.subr.bf16.mxu1 %v4732_v0  ;;  %4197 = vmatprep.subr.bf16.mxu0 %v4732_v0 }
 0x284   :  { %4187 = vmatpush3.bf16.msra.mxu1 %v4921_v2  ;;  %4199 = vmatpush3.bf16.msra.mxu0 %v4936_v20 }
 0x285   :  { %4188 = vmatprep.subr.bf16.mxu1 %v4732_v0  ;;  %4200 = vmatprep.subr.bf16.mxu0 %v4732_v0 }
 0x288   :  { %4190 = vmatpush3.bf16.msra.mxu1 %v4925_v5 }
 0x289   :  { %4203 = vmatprep.subr.bf16.mxu1 %v4732_v0 }
 0x32d   :  { %v251_v21 = vpop.f32.mrb[0].mxu1  ;;  %v334_v22 = vpop.f32.mrb[2].mxu0 }
 0x32e   :  { %v3429_v24 = vpop.f32.mrb[1].mxu1  ;;  %v3448_v25 = vpop.f32.mrb[3].mxu0  ;;  %v4945_v30 = vadd.f32 %v251_v21, %v181_v27  ;;  %v4953_v45 = vadd.f32 %v334_v22, %v267_v44 }
 0x330   :  { %v600_v32 = vadd.f32 %v424_v31, %v4945_v30  ;;  %v608_v58 = vadd.f32 %v428_v48, %v4953_v45  ;;  %v872_v31 = vld [vmem:[#allocation5 + $0x200] sm:$0xff] }
 0x331   :  { %v876_v48 = vld [vmem:[#allocation5 + $0x220] sm:$0xff] }
 0x33d   :  { %v417_v33 = vpop.f32.mrb[2].mxu1  ;;  %v508_v36 = vpop.f32.mrb[4].mxu0 }
 0x33e   :  { %v601_v37 = vadd.f32 %v600_v32, %v508_v36  ;;  %v3467_v38 = vpop.f32.mrb[3].mxu1  ;;  %v3486_v39 = vpop.f32.mrb[5].mxu0  ;;  %v4966_v11 = vadd.f32 %v417_v33, %v350_v4  ;;  %v873_v32 = vld [vmem:[#allocation5 + $0x208] sm:$0xff] }
 0x33f   :  { %v4971_v38 = vpack.c.bf16 %v873_v32, %v872_v31  ;;  %v956_v4 = vld [vmem:[#allocation5 + $0x248] sm:$0xff]  ;;  %v961_v31 = vld [vmem:[#allocation5 + $0x270] sm:$0xff]  ;;  %v962_v32 = vld [vmem:[#allocation5 + $0x278] sm:$0xff] }
 0x340   :  { %v3018_v43 = vmul.f32 -1.442695, %v601_v37  ;;  %v616_v21 = vadd.f32 %v432_v8, %v4966_v11 }
 0x342   :  { %4582 = vpow2.f32 %v3018_v43  ;;  %v875_v43 = vld [vmem:[#allocation5 + $0x218] sm:$0xff] }
 0x343   :  { %v4978_v44 = vpack.c.bf16 %v875_v43, %v874_v42 }
 0x34c   :  { %v4583_v49 = vpop.eup %4582 }
 0x34d   :  { %v605_v50 = vadd.f32 1.0, %v4583_v49  ;;  %v587_v51 = vpop.f32.mrb[4].mxu1  ;;  %v687_v54 = vpop.f32.mrb[6].mxu0 }
 0x34e   :  { %v609_v55 = vadd.f32 %v608_v58, %v587_v51  ;;  %v3505_v59 = vpop.f32.mrb[5].mxu1  ;;  %v3524_v60 = vpop.f32.mrb[7].mxu0  ;;  %v688_v12 = vadd.f32 %v687_v54, %v4963_v6  ;;  %v792_v58 = vld [vmem:[#allocation5 + $0x1f0] sm:$0xff] }
 0x34f   :  { %4584 = vrcp.f32 %v605_v50  ;;  %v793_v50 = vld [vmem:[#allocation5 + $0x1f8] sm:$0xff]  ;;  %v878_v51 = vld [vmem:[#allocation5 + $0x230] sm:$0xff]  ;;  %v4998_v60 = vrot.slane %v4943_v28, %v349_v62 }
 0x350   :  { %v3019_v63 = vmul.f32 -1.442695, %v609_v55  ;;  %v4989_v54 = vpack.c.bf16 %v793_v50, %v792_v58  ;;  %v879_v55 = vld [vmem:[#allocation5 + $0x238] sm:$0xff]  ;;  %v883_v58 = vrot.slane %v4943_v28, %v67_v17 }
 0x351   :  { %v4991_v59 = vpack.c.bf16 %v879_v55, %v878_v51 }
 0x352   :  { %4586 = vpow2.f32 %v3019_v63  ;;  %4202 = vmatpush3.bf16.msra.mxu0 %v4989_v54  ;;  %v955_v63 = vld [vmem:[#allocation5 + $0x240] sm:$0xff] }
 0x353   :  { %4215 = vmatprep.subr.bf16.mxu0 %v4732_v0 }
 0x359   :  { %v4585_v15 = vpop.eup %4584 }
 0x35a   :  { %v691_v19 = vmul.f32 %v4585_v15, %v688_v12 }
 0x35c   :  { %v4587_v22 = vpop.eup %4586  ;;  %v692_v25 = vadd.f32 %v691_v19, %v616_v21  ;;  %v5001_v19 = vpack.c.bf16 %v956_v4, %v955_v63 }
 0x35d   :  { %v613_v24 = vadd.f32 1.0, %v4587_v22  ;;  %v957_v22 = vld [vmem:[#allocation5 + $0x250] sm:$0xff] }
 0x35f   :  { %4588 = vrcp.f32 %v613_v24  ;;  %v958_v24 = vld [vmem:[#allocation5 + $0x258] sm:$0xff] }
 0x360   :  { %4590 = vtanh.f32 %v692_v25  ;;  %v5007_v62 = vpack.c.bf16 %v958_v24, %v957_v22  ;;  %v959_v25 = vld [vmem:[#allocation5 + $0x260] sm:$0xff] }
 0x369   :  { %v4589_v26 = vpop.eup %4588 }
 0x36a   :  { %v694_v27 = vsub.f32 1.0, %v4589_v26  ;;  %v4591_v36 = vpop.eup %4590  ;;  %v696_v33 = vmul.f32 %v4589_v26, %v4837_v9  ;;  %v877_v9 = vld [vmem:[#allocation5 + $0x228] sm:$0xff] }
 0x36b   :  { %v4984_v49 = vpack.c.bf16 %v877_v9, %v876_v48  ;;  %v960_v26 = vld [vmem:[#allocation5 + $0x268] sm:$0xff]  ;;  %v796_v48 = vsub.s32 7, %v4811_v16 }
 0x36c   :  { %v695_v37 = vmul.f32 %v4591_v36, %v694_v27  ;;  %v5017_v27 = vpack.c.bf16 %v960_v26, %v959_v25  ;;  %v5023_v36 = vpack.c.bf16 %v962_v32, %v961_v31 }
 0x36d   :  { %v797_v9 = vrot.slane %v4814_v18, %v796_v48 }
 0x36e   :  { %v4973_v39 = vadd.f32 %v696_v33, %v695_v37 }
 0x36f   :  { %v5084_v50 = vadd.f32 %v797_v9, %v4945_v30  ;;  %v5094_v30 = vrot.slane %v4943_v28, %v161_v57 }
 0x370   :  { %3542 = vmatmul.mubr.msk.f32.vlgmr.msra.gmra.mrb[6].mxu1 %vm69_vm1, %v4973_v39 }
 0x371   :  { %4205 = vmatpush3.bf16.msra.mxu1 %v4971_v38  ;;  %3579 = vmatprep.mubr.msk.f32.mxu1 %vm4733_vm0, %v4734_v1 }
 0x372   :  { %4206 = vmatprep.subr.bf16.mxu1 %v4732_v0 }
 0x375   :  { %4208 = vmatpush3.bf16.msra.mxu1 %v4978_v44 }
 0x376   :  { %4209 = vmatprep.subr.bf16.mxu1 %v4732_v0 }
 0x379   :  { %4211 = vmatpush3.bf16.msra.mxu1 %v4984_v49 }
 0x37a   :  { %4212 = vmatprep.subr.bf16.mxu1 %v4732_v0 }
 0x37d   :  { %4214 = vmatpush3.bf16.msra.mxu1 %v4991_v59 }
 0x37e   :  { %4239 = vmatprep.subr.bf16.mxu1 %v4732_v0 }
 0x443   :  { %v780_v8 = vpop.f32.mrb[6].mxu1 }
 0x444   :  { %v781_v12 = vadd.f32 %v780_v8, %v4998_v60  ;;  %v3543_v15 = vpop.f32.mrb[7].mxu1 }
 0x446   :  { %v784_v21 = vmax.f32 %v781_v12, 0.0  ;;  %v5088_v12 = vadd.f32 %v883_v58, %v4953_v45 }
 0x448   :  { %3561 = vmatmul.mubr.msk.f32.vlgmr.msra.gmra.mrb[8].mxu0 %vm69_vm1, %v784_v21  ;;  %3580 = vmatmul.mubr.msk.f32.vlgmr.msra.gmra.mrb[8].mxu1 %vm69_vm1, %v784_v21 }
 0x449   :  { %4217 = vmatpush3.bf16.msra.mxu0 %v5001_v19  ;;  %4241 = vmatpush3.bf16.msra.mxu1 %v4863_v34 }
 0x44a   :  { %4218 = vmatprep.subr.bf16.mxu0 %v4732_v0  ;;  %4242 = vmatprep.subr.bf16.mxu1 %v4732_v0 }
 0x44b   :  { %3598 = vmatprep.mubr.msk.f32.mxu0 %vm4733_vm0, %v4734_v1  ;;  %3636 = vmatprep.mubr.msk.f32.mxu1 %vm4733_vm0, %v4734_v1 }
 0x44d   :  { %4220 = vmatpush3.bf16.msra.mxu0 %v5007_v62  ;;  %4244 = vmatpush3.bf16.msra.mxu1 %v4875_v40 }
 0x44e   :  { %4221 = vmatprep.subr.bf16.mxu0 %v4732_v0  ;;  %4245 = vmatprep.subr.bf16.mxu1 %v4732_v0 }
 0x451   :  { %4223 = vmatpush3.bf16.msra.mxu0 %v5017_v27  ;;  %4247 = vmatpush3.bf16.msra.mxu1 %v4887_v46 }
 0x452   :  { %4224 = vmatprep.subr.bf16.mxu0 %v4732_v0  ;;  %4248 = vmatprep.subr.bf16.mxu1 %v4732_v0 }
 0x455   :  { %4226 = vmatpush3.bf16.msra.mxu0 %v5023_v36  ;;  %4250 = vmatpush3.bf16.msra.mxu1 %v4895_v52 }
 0x456   :  { %4227 = vmatprep.subr.bf16.mxu0 %v4732_v0  ;;  %4251 = vmatprep.subr.bf16.mxu1 %v4732_v0 }
 0x458   :  { %3599 = vmatmul.mubr.msk.f32.vlgmr.msra.gmra.mrb[10].mxu0 %vm69_vm1, %v784_v21  ;;  %3637 = vmatmul.mubr.msk.f32.vlgmr.msra.gmra.mrb[8].mxu1 %vm69_vm1, %v4973_v39 }
 0x459   :  { %4229 = vmatpush3.bf16.msra.mxu0 %v4835_v7  ;;  %4253 = vmatpush3.bf16.msra.mxu1 %v4865_v35 }
 0x45a   :  { %4230 = vmatprep.subr.bf16.mxu0 %v4732_v0  ;;  %4254 = vmatprep.subr.bf16.mxu1 %v4732_v0 }
 0x45b   :  { %3617 = vmatprep.mubr.msk.f32.mxu0 %vm4733_vm0, %v4734_v1  ;;  %3655 = vmatprep.mubr.msk.f32.mxu1 %vm4733_vm0, %v4734_v1 }
 0x45d   :  { %4232 = vmatpush3.bf16.msra.mxu0 %v4844_v14  ;;  %4256 = vmatpush3.bf16.msra.mxu1 %v4877_v41 }
 0x45e   :  { %4233 = vmatprep.subr.bf16.mxu0 %v4732_v0  ;;  %4257 = vmatprep.subr.bf16.mxu1 %v4732_v0 }
 0x461   :  { %4235 = vmatpush3.bf16.msra.mxu0 %v4853_v23  ;;  %4259 = vmatpush3.bf16.msra.mxu1 %v4889_v47 }
 0x462   :  { %4236 = vmatprep.subr.bf16.mxu0 %v4732_v0  ;;  %4260 = vmatprep.subr.bf16.mxu1 %v4732_v0 }
 0x465   :  { %4238 = vmatpush3.bf16.msra.mxu0 %v4858_v29  ;;  %4262 = vmatpush3.bf16.msra.mxu1 %v4897_v53 }
 0x466   :  { %4263 = vmatprep.subr.bf16.mxu0 %v4732_v0  ;;  %4275 = vmatprep.subr.bf16.mxu1 %v4732_v0 }
 0x468   :  { %3618 = vmatmul.mubr.msk.f32.vlgmr.msra.gmra.mrb[8].mxu0 %vm69_vm1, %v4973_v39  ;;  %3656 = vmatmul.mubr.msk.f32.vlgmr.msra.gmra.mrb[10].mxu1 %vm69_vm1, %v4973_v39 }
 0x469   :  { %4265 = vmatpush3.bf16.msra.mxu0 %v4913_v56  ;;  %3674 = vmatprep.mubr.msk.f32.mxu0 %vm4733_vm0, %v4734_v1 }
 0x46a   :  { %4266 = vmatprep.subr.bf16.mxu0 %v4732_v0  ;;  %4277 = vmatpush3.bf16.msra.mxu1 %v4929_v10 }
 0x46b   :  { %4278 = vmatprep.subr.bf16.mxu1 %v4732_v0  ;;  %3693 = vmatprep.mubr.msk.f32.mxu1 %vm4733_vm0, %v4734_v1 }
 0x46d   :  { %4268 = vmatpush3.bf16.msra.mxu0 %v4917_v61 }
 0x46e   :  { %4269 = vmatprep.subr.bf16.mxu0 %v4732_v0  ;;  %4280 = vmatpush3.bf16.msra.mxu1 %v4932_v13 }
 0x46f   :  { %4281 = vmatprep.subr.bf16.mxu1 %v4732_v0 }
 0x471   :  { %4271 = vmatpush3.bf16.msra.mxu0 %v4921_v2 }
 0x472   :  { %4272 = vmatprep.subr.bf16.mxu0 %v4732_v0  ;;  %4283 = vmatpush3.bf16.msra.mxu1 %v4936_v20 }
 0x473   :  { %4284 = vmatprep.subr.bf16.mxu1 %v4732_v0 }
 0x475   :  { %4274 = vmatpush3.bf16.msra.mxu0 %v4925_v5 }
 0x476   :  { %4287 = vmatprep.subr.bf16.mxu0 %v4732_v0  ;;  %4286 = vmatpush3.bf16.msra.mxu1 %v4989_v54 }
 0x477   :  { %4299 = vmatprep.subr.bf16.mxu1 %v4732_v0 }
 0x52b   :  { %v1033_v37 = vpop.f32.mrb[10].mxu0  ;;  %v1173_v33 = vpop.f32.mrb[8].mxu1 }
 0x52c   :  { %v3600_v42 = vpop.f32.mrb[11].mxu0  ;;  %v3638_v43 = vpop.f32.mrb[9].mxu1  ;;  %v4542_v21 = vadd.f32 %v5088_v12, %v1173_v33  ;;  %v1034_v25 = vadd.f32 %v1033_v37, %v5094_v30 }
 0x52e   :  { %v3028_v18 = vmul.f32 -1.442695, %v4542_v21  ;;  %v1193_v32 = vadd.f32 %v1034_v25, %v4966_v11 }
 0x53b   :  { %v1103_v51 = vpop.f32.mrb[8].mxu0  ;;  %v1260_v55 = vpop.f32.mrb[10].mxu1 }
 0x53c   :  { %v4540_v63 = vadd.f32 %v5084_v50, %v1103_v51  ;;  %v3619_v4 = vpop.f32.mrb[9].mxu0  ;;  %v3657_v8 = vpop.f32.mrb[11].mxu1  ;;  %v1261_v45 = vadd.f32 %v1260_v55, %v4963_v6 }
 0x53e   :  { %v3027_v15 = vmul.f32 -1.442695, %v4540_v63 }
 0x540   :  { %4592 = vpow2.f32 %v3027_v15 }
 0x541   :  { %4594 = vpow2.f32 %v3028_v18 }
 0x54a   :  { %v4593_v22 = vpop.eup %4592 }
 0x54b   :  { %v1182_v17 = vadd.f32 1.0, %v4593_v22  ;;  %v4595_v24 = vpop.eup %4594 }
 0x54c   :  { %v1190_v26 = vadd.f32 1.0, %v4595_v24 }
 0x54d   :  { %4596 = vrcp.f32 %v1182_v17 }
 0x54e   :  { %4598 = vrcp.f32 %v1190_v26 }
 0x557   :  { %v4597_v31 = vpop.eup %4596 }
 0x558   :  { %v1264_v33 = vmul.f32 %v4597_v31, %v1261_v45  ;;  %v4599_v43 = vpop.eup %4598 }
 0x559   :  { %v1267_v48 = vsub.f32 1.0, %v4599_v43  ;;  %v1269_v57 = vmul.f32 %v4599_v43, %v4973_v39 }
 0x55a   :  { %v1265_v42 = vadd.f32 %v1264_v33, %v1193_v32 }
 0x55c   :  { %4600 = vtanh.f32 %v1265_v42 }
 0x566   :  { %v4601_v9 = vpop.eup %4600 }
 0x567   :  { %v1268_v58 = vmul.f32 %v4601_v9, %v1267_v48 }
 0x569   :  { %v5100_v28 = vadd.f32 %v1269_v57, %v1268_v58 }
 0x56b   :  { %3675 = vmatmul.mubr.msk.f32.vlgmr.msra.gmra.mrb[12].mxu0 %vm69_vm1, %v5100_v28 }
 0x56c   :  { %4289 = vmatpush3.bf16.msra.mxu0 %v4971_v38  ;;  %3712 = vmatprep.mubr.msk.f32.mxu0 %vm4733_vm0, %v4734_v1 }
 0x56d   :  { %4290 = vmatprep.subr.bf16.mxu0 %v4732_v0 }
 0x570   :  { %4292 = vmatpush3.bf16.msra.mxu0 %v4978_v44 }
 0x571   :  { %4293 = vmatprep.subr.bf16.mxu0 %v4732_v0 }
 0x574   :  { %4295 = vmatpush3.bf16.msra.mxu0 %v4984_v49 }
 0x575   :  { %4296 = vmatprep.subr.bf16.mxu0 %v4732_v0 }
 0x578   :  { %4298 = vmatpush3.bf16.msra.mxu0 %v4991_v59 }
 0x579   :  { %4323 = vmatprep.subr.bf16.mxu0 %v4732_v0 }
 0x63e   :  { %v1340_v39 = vpop.f32.mrb[12].mxu0 }
 0x63f   :  { %v1341_v37 = vadd.f32 %v1340_v39, %v4998_v60  ;;  %v3676_v51 = vpop.f32.mrb[13].mxu0 }
 0x641   :  { %v1344_v55 = vmax.f32 %v1341_v37, 0.0 }
 0x643   :  { %3694 = vmatmul.mubr.msk.f32.vlgmr.msra.gmra.mrb[12].mxu1 %vm69_vm1, %v1344_v55  ;;  %3713 = vmatmul.mubr.msk.f32.vlgmr.msra.gmra.mrb[14].mxu0 %vm69_vm1, %v1344_v55 }
 0x644   :  { %4301 = vmatpush3.bf16.msra.mxu1 %v5001_v19  ;;  %4325 = vmatpush3.bf16.msra.mxu0 %v4863_v34 }
 0x645   :  { %4302 = vmatprep.subr.bf16.mxu1 %v4732_v0  ;;  %4326 = vmatprep.subr.bf16.mxu0 %v4732_v0 }
 0x646   :  { %3731 = vmatprep.mubr.msk.f32.mxu1 %vm4733_vm0, %v4734_v1  ;;  %3769 = vmatprep.mubr.msk.f32.mxu0 %vm4733_vm0, %v4734_v1 }
 0x648   :  { %4304 = vmatpush3.bf16.msra.mxu1 %v5007_v62  ;;  %4328 = vmatpush3.bf16.msra.mxu0 %v4875_v40 }
 0x649   :  { %4305 = vmatprep.subr.bf16.mxu1 %v4732_v0  ;;  %4329 = vmatprep.subr.bf16.mxu0 %v4732_v0 }
 0x64c   :  { %4307 = vmatpush3.bf16.msra.mxu1 %v5017_v27  ;;  %4331 = vmatpush3.bf16.msra.mxu0 %v4887_v46 }
 0x64d   :  { %4308 = vmatprep.subr.bf16.mxu1 %v4732_v0  ;;  %4332 = vmatprep.subr.bf16.mxu0 %v4732_v0 }
 0x650   :  { %4310 = vmatpush3.bf16.msra.mxu1 %v5023_v36  ;;  %4334 = vmatpush3.bf16.msra.mxu0 %v4895_v52 }
 0x651   :  { %4311 = vmatprep.subr.bf16.mxu1 %v4732_v0  ;;  %4335 = vmatprep.subr.bf16.mxu0 %v4732_v0 }
 0x653   :  { %3732 = vmatmul.mubr.msk.f32.vlgmr.msra.gmra.mrb[14].mxu1 %vm69_vm1, %v1344_v55  ;;  %3770 = vmatmul.mubr.msk.f32.vlgmr.msra.gmra.mrb[14].mxu0 %vm69_vm1, %v5100_v28 }
 0x654   :  { %4313 = vmatpush3.bf16.msra.mxu1 %v4835_v7  ;;  %4337 = vmatpush3.bf16.msra.mxu0 %v4865_v35 }
 0x655   :  { %4314 = vmatprep.subr.bf16.mxu1 %v4732_v0  ;;  %4338 = vmatprep.subr.bf16.mxu0 %v4732_v0 }
 0x656   :  { %3750 = vmatprep.mubr.msk.f32.mxu1 %vm4733_vm0, %v4734_v1  ;;  %3788 = vmatprep.mubr.msk.f32.mxu0 %vm4733_vm0, %v4734_v1 }
 0x658   :  { %4316 = vmatpush3.bf16.msra.mxu1 %v4844_v14  ;;  %4340 = vmatpush3.bf16.msra.mxu0 %v4877_v41 }
 0x659   :  { %4317 = vmatprep.subr.bf16.mxu1 %v4732_v0  ;;  %4341 = vmatprep.subr.bf16.mxu0 %v4732_v0 }
 0x65c   :  { %4319 = vmatpush3.bf16.msra.mxu1 %v4853_v23  ;;  %4343 = vmatpush3.bf16.msra.mxu0 %v4889_v47 }
 0x65d   :  { %4320 = vmatprep.subr.bf16.mxu1 %v4732_v0  ;;  %4344 = vmatprep.subr.bf16.mxu0 %v4732_v0 }
 0x660   :  { %4322 = vmatpush3.bf16.msra.mxu1 %v4858_v29  ;;  %4346 = vmatpush3.bf16.msra.mxu0 %v4897_v53 }
 0x661   :  { %4347 = vmatprep.subr.bf16.mxu1 %v4732_v0  ;;  %4359 = vmatprep.subr.bf16.mxu0 %v4732_v0 }
 0x663   :  { %3751 = vmatmul.mubr.msk.f32.vlgmr.msra.gmra.mrb[12].mxu1 %vm69_vm1, %v5100_v28  ;;  %3789 = vmatmul.mubr.msk.f32.vlgmr.msra.gmra.mrb[16].mxu0 %vm69_vm1, %v5100_v28 }
 0x664   :  { %4349 = vmatpush3.bf16.msra.mxu1 %v4913_v56  ;;  %3807 = vmatprep.mubr.msk.f32.mxu1 %vm4733_vm0, %v4734_v1 }
 0x665   :  { %4350 = vmatprep.subr.bf16.mxu1 %v4732_v0  ;;  %4361 = vmatpush3.bf16.msra.mxu0 %v4929_v10 }
 0x666   :  { %4362 = vmatprep.subr.bf16.mxu0 %v4732_v0  ;;  %3826 = vmatprep.mubr.msk.f32.mxu0 %vm4733_vm0, %v4734_v1 }
 0x668   :  { %4352 = vmatpush3.bf16.msra.mxu1 %v4917_v61 }
 0x669   :  { %4353 = vmatprep.subr.bf16.mxu1 %v4732_v0  ;;  %4364 = vmatpush3.bf16.msra.mxu0 %v4932_v13 }
 0x66a   :  { %4365 = vmatprep.subr.bf16.mxu0 %v4732_v0 }
 0x66c   :  { %4355 = vmatpush3.bf16.msra.mxu1 %v4921_v2 }
 0x66d   :  { %4356 = vmatprep.subr.bf16.mxu1 %v4732_v0  ;;  %4367 = vmatpush3.bf16.msra.mxu0 %v4936_v20 }
 0x66e   :  { %4368 = vmatprep.subr.bf16.mxu0 %v4732_v0 }
 0x670   :  { %4358 = vmatpush3.bf16.msra.mxu1 %v4925_v5 }
 0x671   :  { %4371 = vmatprep.subr.bf16.mxu1 %v4732_v0  ;;  %4370 = vmatpush3.bf16.msra.mxu0 %v4989_v54 }
 0x672   :  { %4383 = vmatprep.subr.bf16.mxu0 %v4732_v0 }
 0x726   :  { %v1554_v63 = vpop.f32.mrb[14].mxu1  ;;  %v1694_v4 = vpop.f32.mrb[14].mxu0 }
 0x727   :  { %v3733_v8 = vpop.f32.mrb[15].mxu1  ;;  %v3771_v15 = vpop.f32.mrb[15].mxu0  ;;  %v4546_v26 = vadd.f32 %v5088_v12, %v1694_v4  ;;  %v1555_v42 = vadd.f32 %v1554_v63, %v5094_v30 }
 0x729   :  { %v3037_v45 = vmul.f32 -1.442695, %v4546_v26  ;;  %v1714_v58 = vadd.f32 %v1555_v42, %v4966_v11 }
 0x736   :  { %v1624_v21 = vpop.f32.mrb[12].mxu1  ;;  %v1781_v18 = vpop.f32.mrb[16].mxu0 }
 0x737   :  { %v4544_v22 = vadd.f32 %v5084_v50, %v1624_v21  ;;  %v3752_v17 = vpop.f32.mrb[13].mxu1  ;;  %v3790_v24 = vpop.f32.mrb[17].mxu0  ;;  %v1782_v48 = vadd.f32 %v1781_v18, %v4963_v6 }
 0x739   :  { %v3036_v25 = vmul.f32 -1.442695, %v4544_v22 }
 0x73b   :  { %4602 = vpow2.f32 %v3036_v25 }
 0x73c   :  { %4604 = vpow2.f32 %v3037_v45 }
 0x745   :  { %v4603_v31 = vpop.eup %4602 }
 0x746   :  { %v1703_v32 = vadd.f32 1.0, %v4603_v31  ;;  %v4605_v33 = vpop.eup %4604 }
 0x747   :  { %v1711_v43 = vadd.f32 1.0, %v4605_v33 }
 0x748   :  { %4606 = vrcp.f32 %v1703_v32 }
 0x749   :  { %4608 = vrcp.f32 %v1711_v43 }
 0x752   :  { %v4607_v9 = vpop.eup %4606 }
 0x753   :  { %v1785_v57 = vmul.f32 %v4607_v9, %v1782_v48  ;;  %v4609_v37 = vpop.eup %4608 }
 0x754   :  { %v1788_v51 = vsub.f32 1.0, %v4609_v37  ;;  %v1790_v8 = vmul.f32 %v4609_v37, %v5100_v28 }
 0x755   :  { %v1786_v39 = vadd.f32 %v1785_v57, %v1714_v58 }
 0x757   :  { %4610 = vtanh.f32 %v1786_v39 }
 0x761   :  { %v4611_v55 = vpop.eup %4610 }
 0x762   :  { %v1789_v4 = vmul.f32 %v4611_v55, %v1788_v51 }
 0x764   :  { %v5190_v15 = vadd.f32 %v1790_v8, %v1789_v4 }
 0x766   :  { %3808 = vmatmul.mubr.msk.f32.vlgmr.msra.gmra.mrb[16].mxu1 %vm69_vm1, %v5190_v15 }
 0x767   :  { %4373 = vmatpush3.bf16.msra.mxu1 %v4971_v38  ;;  %3845 = vmatprep.mubr.msk.f32.mxu1 %vm4733_vm0, %v4734_v1 }
 0x768   :  { %4374 = vmatprep.subr.bf16.mxu1 %v4732_v0 }
 0x76b   :  { %4376 = vmatpush3.bf16.msra.mxu1 %v4978_v44 }
 0x76c   :  { %4377 = vmatprep.subr.bf16.mxu1 %v4732_v0 }
 0x76f   :  { %4379 = vmatpush3.bf16.msra.mxu1 %v4984_v49 }
 0x770   :  { %4380 = vmatprep.subr.bf16.mxu1 %v4732_v0 }
 0x773   :  { %4382 = vmatpush3.bf16.msra.mxu1 %v4991_v59 }
 0x774   :  { %4407 = vmatprep.subr.bf16.mxu1 %v4732_v0 }
 0x839   :  { %v1861_v28 = vpop.f32.mrb[16].mxu1 }
 0x83a   :  { %v1862_v63 = vadd.f32 %v1861_v28, %v4998_v60  ;;  %v3809_v21 = vpop.f32.mrb[17].mxu1 }
 0x83c   :  { %v1865_v18 = vmax.f32 %v1862_v63, 0.0 }
 0x83e   :  { %3827 = vmatmul.mubr.msk.f32.vlgmr.msra.gmra.mrb[18].mxu0 %vm69_vm1, %v1865_v18  ;;  %3846 = vmatmul.mubr.msk.f32.vlgmr.msra.gmra.mrb[18].mxu1 %vm69_vm1, %v1865_v18 }
 0x83f   :  { %4385 = vmatpush3.bf16.msra.mxu0 %v5001_v19  ;;  %4409 = vmatpush3.bf16.msra.mxu1 %v4863_v34 }
 0x840   :  { %4386 = vmatprep.subr.bf16.mxu0 %v4732_v0  ;;  %4410 = vmatprep.subr.bf16.mxu1 %v4732_v0 }
 0x841   :  { %3864 = vmatprep.mubr.msk.f32.mxu0 %vm4733_vm0, %v4734_v1  ;;  %3902 = vmatprep.mubr.msk.f32.mxu1 %vm4733_vm0, %v4734_v1 }
 0x843   :  { %4388 = vmatpush3.bf16.msra.mxu0 %v5007_v62  ;;  %4412 = vmatpush3.bf16.msra.mxu1 %v4875_v40 }
 0x844   :  { %4389 = vmatprep.subr.bf16.mxu0 %v4732_v0  ;;  %4413 = vmatprep.subr.bf16.mxu1 %v4732_v0 }
 0x847   :  { %4391 = vmatpush3.bf16.msra.mxu0 %v5017_v27  ;;  %4415 = vmatpush3.bf16.msra.mxu1 %v4887_v46 }
 0x848   :  { %4392 = vmatprep.subr.bf16.mxu0 %v4732_v0  ;;  %4416 = vmatprep.subr.bf16.mxu1 %v4732_v0 }
 0x84b   :  { %4394 = vmatpush3.bf16.msra.mxu0 %v5023_v36  ;;  %4418 = vmatpush3.bf16.msra.mxu1 %v4895_v52 }
 0x84c   :  { %4395 = vmatprep.subr.bf16.mxu0 %v4732_v0  ;;  %4419 = vmatprep.subr.bf16.mxu1 %v4732_v0 }
 0x84e   :  { %3865 = vmatmul.mubr.msk.f32.vlgmr.msra.gmra.mrb[20].mxu0 %vm69_vm1, %v1865_v18  ;;  %3903 = vmatmul.mubr.msk.f32.vlgmr.msra.gmra.mrb[18].mxu1 %vm69_vm1, %v5190_v15 }
 0x84f   :  { %4397 = vmatpush3.bf16.msra.mxu0 %v4835_v7  ;;  %4421 = vmatpush3.bf16.msra.mxu1 %v4865_v35 }
 0x850   :  { %4398 = vmatprep.subr.bf16.mxu0 %v4732_v0  ;;  %4422 = vmatprep.subr.bf16.mxu1 %v4732_v0 }
 0x851   :  { %3883 = vmatprep.mubr.msk.f32.mxu0 %vm4733_vm0, %v4734_v1  ;;  %3921 = vmatprep.mubr.msk.f32.mxu1 %vm4733_vm0, %v4734_v1 }
 0x853   :  { %4400 = vmatpush3.bf16.msra.mxu0 %v4844_v14  ;;  %4424 = vmatpush3.bf16.msra.mxu1 %v4877_v41 }
 0x854   :  { %4401 = vmatprep.subr.bf16.mxu0 %v4732_v0  ;;  %4425 = vmatprep.subr.bf16.mxu1 %v4732_v0 }
 0x857   :  { %4403 = vmatpush3.bf16.msra.mxu0 %v4853_v23  ;;  %4427 = vmatpush3.bf16.msra.mxu1 %v4889_v47 }
 0x858   :  { %4404 = vmatprep.subr.bf16.mxu0 %v4732_v0  ;;  %4428 = vmatprep.subr.bf16.mxu1 %v4732_v0 }
 0x85b   :  { %4406 = vmatpush3.bf16.msra.mxu0 %v4858_v29  ;;  %4430 = vmatpush3.bf16.msra.mxu1 %v4897_v53 }
 0x85c   :  { %4431 = vmatprep.subr.bf16.mxu0 %v4732_v0  ;;  %4443 = vmatprep.subr.bf16.mxu1 %v4732_v0 }
 0x85e   :  { %3884 = vmatmul.mubr.msk.f32.vlgmr.msra.gmra.mrb[18].mxu0 %vm69_vm1, %v5190_v15  ;;  %3922 = vmatmul.mubr.msk.f32.vlgmr.msra.gmra.mrb[20].mxu1 %vm69_vm1, %v5190_v15 }
 0x85f   :  { %4433 = vmatpush3.bf16.msra.mxu0 %v4913_v56  ;;  %3940 = vmatprep.mubr.msk.f32.mxu0 %vm4733_vm0, %v4734_v1 }
 0x860   :  { %4434 = vmatprep.subr.bf16.mxu0 %v4732_v0  ;;  %4445 = vmatpush3.bf16.msra.mxu1 %v4929_v10 }
 0x861   :  { %4446 = vmatprep.subr.bf16.mxu1 %v4732_v0  ;;  %3959 = vmatprep.mubr.msk.f32.mxu1 %vm4733_vm0, %v4734_v1 }
 0x863   :  { %4436 = vmatpush3.bf16.msra.mxu0 %v4917_v61 }
 0x864   :  { %4437 = vmatprep.subr.bf16.mxu0 %v4732_v0  ;;  %4448 = vmatpush3.bf16.msra.mxu1 %v4932_v13 }
 0x865   :  { %4449 = vmatprep.subr.bf16.mxu1 %v4732_v0 }
 0x867   :  { %4439 = vmatpush3.bf16.msra.mxu0 %v4921_v2 }
 0x868   :  { %4440 = vmatprep.subr.bf16.mxu0 %v4732_v0  ;;  %4451 = vmatpush3.bf16.msra.mxu1 %v4936_v20 }
 0x869   :  { %4452 = vmatprep.subr.bf16.mxu1 %v4732_v0 }
 0x86b   :  { %4442 = vmatpush3.bf16.msra.mxu0 %v4925_v5 }
 0x86c   :  { %4455 = vmatprep.subr.bf16.mxu0 %v4732_v0  ;;  %4454 = vmatpush3.bf16.msra.mxu1 %v4989_v54 }
 0x86d   :  { %4467 = vmatprep.subr.bf16.mxu1 %v4732_v0 }
 0x921   :  { %v2075_v10 = vpop.f32.mrb[20].mxu0  ;;  %v2215_v13 = vpop.f32.mrb[18].mxu1 }
 0x922   :  { %v3866_v22 = vpop.f32.mrb[21].mxu0  ;;  %v3904_v17 = vpop.f32.mrb[19].mxu1  ;;  %v4550_v32 = vadd.f32 %v5088_v12, %v2215_v13  ;;  %v2076_v48 = vadd.f32 %v2075_v10, %v5094_v30 }
 0x924   :  { %v3046_v33 = vmul.f32 -1.442695, %v4550_v32  ;;  %v2235_v39 = vadd.f32 %v2076_v48, %v4966_v11  ;;  %v4632_v48 = vld [vmem:[#allocation7 + $0x8] sm:$0xff] }
 0x931   :  { %v2145_v24 = vpop.f32.mrb[18].mxu0  ;;  %v2302_v25 = vpop.f32.mrb[20].mxu1 }
 0x932   :  { %v4548_v26 = vadd.f32 %v5084_v50, %v2145_v24  ;;  %v3885_v45 = vpop.f32.mrb[19].mxu0  ;;  %v3923_v20 = vpop.f32.mrb[21].mxu1  ;;  %v2303_v58 = vadd.f32 %v2302_v25, %v4963_v6 }
 0x934   :  { %v3045_v31 = vmul.f32 -1.442695, %v4548_v26 }
 0x936   :  { %4612 = vpow2.f32 %v3045_v31 }
 0x937   :  { %4614 = vpow2.f32 %v3046_v33  ;;  %v2916_v33 = vld [vmem:[#allocation5 + $0x2f8] sm:$0xff] }
 0x940   :  { %v4613_v42 = vpop.eup %4612 }
 0x941   :  { %v2224_v54 = vadd.f32 1.0, %v4613_v42  ;;  %v4615_v43 = vpop.eup %4614 }
 0x942   :  { %v2232_v9 = vadd.f32 1.0, %v4615_v43 }
 0x943   :  { %4616 = vrcp.f32 %v2224_v54 }
 0x944   :  { %4618 = vrcp.f32 %v2232_v9  ;;  %v2920_v9 = vrot.slane %v4632_v48, %v619_v3 }
 0x94d   :  { %v4617_v57 = vpop.eup %4616 }
 0x94e   :  { %v2306_v37 = vmul.f32 %v4617_v57, %v2303_v58  ;;  %v4619_v55 = vpop.eup %4618 }
 0x94f   :  { %v2309_v4 = vsub.f32 1.0, %v4619_v55  ;;  %v2311_v63 = vmul.f32 %v4619_v55, %v5190_v15 }
 0x950   :  { %v2307_v51 = vadd.f32 %v2306_v37, %v2235_v39 }
 0x952   :  { %4620 = vtanh.f32 %v2307_v51 }
 0x95c   :  { %v4621_v8 = vpop.eup %4620 }
 0x95d   :  { %v2310_v28 = vmul.f32 %v4621_v8, %v2309_v4 }
 0x95f   :  { %v5280_v21 = vadd.f32 %v2311_v63, %v2310_v28 }
 0x961   :  { %3941 = vmatmul.mubr.msk.f32.vlgmr.msra.gmra.mrb[22].mxu0 %vm69_vm1, %v5280_v21 }
 0x962   :  { %4457 = vmatpush3.bf16.msra.mxu0 %v4971_v38  ;;  %3978 = vmatprep.mubr.msk.f32.mxu0 %vm4733_vm0, %v4734_v1 }
 0x963   :  { %4458 = vmatprep.subr.bf16.mxu0 %v4732_v0 }
 0x966   :  { %4460 = vmatpush3.bf16.msra.mxu0 %v4978_v44 }
 0x967   :  { %4461 = vmatprep.subr.bf16.mxu0 %v4732_v0 }
 0x96a   :  { %4463 = vmatpush3.bf16.msra.mxu0 %v4984_v49 }
 0x96b   :  { %4464 = vmatprep.subr.bf16.mxu0 %v4732_v0 }
 0x96e   :  { %4466 = vmatpush3.bf16.msra.mxu0 %v4991_v59 }
 0x96f   :  { %4491 = vmatprep.subr.bf16.mxu0 %v4732_v0 }
 0xa34   :  { %v2382_v15 = vpop.f32.mrb[22].mxu0 }
 0xa35   :  { %v2383_v38 = vadd.f32 %v2382_v15, %v4998_v60  ;;  %v3942_v18 = vpop.f32.mrb[23].mxu0 }
 0xa37   :  { %v2386_v10 = vmax.f32 %v2383_v38, 0.0 }
 0xa39   :  { %3960 = vmatmul.mubr.msk.f32.vlgmr.msra.gmra.mrb[22].mxu1 %vm69_vm1, %v2386_v10  ;;  %3979 = vmatmul.mubr.msk.f32.vlgmr.msra.gmra.mrb[24].mxu0 %vm69_vm1, %v2386_v10 }
 0xa3a   :  { %4469 = vmatpush3.bf16.msra.mxu1 %v5001_v19  ;;  %4493 = vmatpush3.bf16.msra.mxu0 %v4863_v34  ;;  %v2912_v34 = vld [vmem:[#allocation5 + $0x2d8] sm:$0xff] }
 0xa3b   :  { %4470 = vmatprep.subr.bf16.mxu1 %v4732_v0  ;;  %4494 = vmatprep.subr.bf16.mxu0 %v4732_v0 }
 0xa3c   :  { %3997 = vmatprep.mubr.msk.f32.mxu1 %vm4733_vm0, %v4734_v1  ;;  %4035 = vmatprep.mubr.msk.f32.mxu0 %vm4733_vm0, %v4734_v1 }
 0xa3e   :  { %4472 = vmatpush3.bf16.msra.mxu1 %v5007_v62  ;;  %4496 = vmatpush3.bf16.msra.mxu0 %v4875_v40  ;;  %v2914_v40 = vld [vmem:[#allocation5 + $0x2e8] sm:$0xff] }
 0xa3f   :  { %4473 = vmatprep.subr.bf16.mxu1 %v4732_v0  ;;  %4497 = vmatprep.subr.bf16.mxu0 %v4732_v0 }
 0xa42   :  { %4475 = vmatpush3.bf16.msra.mxu1 %v5017_v27  ;;  %4499 = vmatpush3.bf16.msra.mxu0 %v4887_v46 }
 0xa43   :  { %4476 = vmatprep.subr.bf16.mxu1 %v4732_v0  ;;  %4500 = vmatprep.subr.bf16.mxu0 %v4732_v0 }
 0xa46   :  { %4478 = vmatpush3.bf16.msra.mxu1 %v5023_v36  ;;  %4502 = vmatpush3.bf16.msra.mxu0 %v4895_v52 }
 0xa47   :  { %4479 = vmatprep.subr.bf16.mxu1 %v4732_v0  ;;  %4503 = vmatprep.subr.bf16.mxu0 %v4732_v0 }
 0xa49   :  { %3998 = vmatmul.mubr.msk.f32.vlgmr.msra.gmra.mrb[24].mxu1 %vm69_vm1, %v2386_v10  ;;  %4036 = vmatmul.mubr.msk.f32.vlgmr.msra.gmra.mrb[24].mxu0 %vm69_vm1, %v5280_v21 }
 0xa4a   :  { %4481 = vmatpush3.bf16.msra.mxu1 %v4835_v7  ;;  %4505 = vmatpush3.bf16.msra.mxu0 %v4865_v35  ;;  %v2909_v7 = vld [vmem:[#allocation5 + $0x2c0] sm:$0xff] }
 0xa4b   :  { %4482 = vmatprep.subr.bf16.mxu1 %v4732_v0  ;;  %4506 = vmatprep.subr.bf16.mxu0 %v4732_v0 }
 0xa4c   :  { %4016 = vmatprep.mubr.msk.f32.mxu1 %vm4733_vm0, %v4734_v1  ;;  %4054 = vmatprep.mubr.msk.f32.mxu0 %vm4733_vm0, %v4734_v1 }
 0xa4e   :  { %4484 = vmatpush3.bf16.msra.mxu1 %v4844_v14  ;;  %4508 = vmatpush3.bf16.msra.mxu0 %v4877_v41  ;;  %v2910_v14 = vld [vmem:[#allocation5 + $0x2c8] sm:$0xff] }
 0xa4f   :  { %4485 = vmatprep.subr.bf16.mxu1 %v4732_v0  ;;  %4509 = vmatprep.subr.bf16.mxu0 %v4732_v0 }
 0xa52   :  { %4487 = vmatpush3.bf16.msra.mxu1 %v4853_v23  ;;  %4511 = vmatpush3.bf16.msra.mxu0 %v4889_v47  ;;  %v2911_v23 = vld [vmem:[#allocation5 + $0x2d0] sm:$0xff] }
 0xa53   :  { %4488 = vmatprep.subr.bf16.mxu1 %v4732_v0  ;;  %4512 = vmatprep.subr.bf16.mxu0 %v4732_v0  ;;  %v4531_v35 = vpack.c.bf16 %v2912_v34, %v2911_v23 }
 0xa56   :  { %4490 = vmatpush3.bf16.msra.mxu1 %v4858_v29  ;;  %4514 = vmatpush3.bf16.msra.mxu0 %v4897_v53  ;;  %v4528_v29 = vpack.c.bf16 %v2910_v14, %v2909_v7 }
 0xa57   :  { %4515 = vmatprep.subr.bf16.mxu1 %v4732_v0  ;;  %4527 = vmatprep.subr.bf16.mxu0 %v4732_v0 }
 0xa59   :  { %4017 = vmatmul.mubr.msk.f32.vlgmr.msra.gmra.mrb[22].mxu1 %vm69_vm1, %v5280_v21  ;;  %4055 = vmatmul.mubr.msk.f32.vlgmr.msra.gmra.mrb[26].mxu0 %vm69_vm1, %v5280_v21 }
 0xa5a   :  { %4517 = vmatpush3.bf16.msra.mxu1 %v4913_v56  ;;  %4073 = vmatprep.mubr.msk.f32.mxu1 %vm4733_vm0, %v4734_v1 }
 0xa5b   :  { %4518 = vmatprep.subr.bf16.mxu1 %v4732_v0  ;;  %4092 = vmatprep.mubr.msk.f32.mxu0 %vm4733_vm0, %v4734_v1  ;;  %v2913_v1 = vld [vmem:[#allocation5 + $0x2e0] sm:$0xff] }
 0xa5c   :  { %4529 = vmatpush3.bf16.msra.mxu0 %v4528_v29  ;;  %v4534_v41 = vpack.c.bf16 %v2914_v40, %v2913_v1 }
 0xa5d   :  { %4530 = vmatprep.subr.bf16.mxu0 %v4732_v0 }
 0xa5e   :  { %4520 = vmatpush3.bf16.msra.mxu1 %v4917_v61 }
 0xa5f   :  { %4521 = vmatprep.subr.bf16.mxu1 %v4732_v0 }
 0xa60   :  { %4532 = vmatpush3.bf16.msra.mxu0 %v4531_v35 }
 0xa61   :  { %4533 = vmatprep.subr.bf16.mxu0 %v4732_v0 }
 0xa62   :  { %4523 = vmatpush3.bf16.msra.mxu1 %v4921_v2 }
 0xa63   :  { %4524 = vmatprep.subr.bf16.mxu1 %v4732_v0 }
 0xa64   :  { %4535 = vmatpush3.bf16.msra.mxu0 %v4534_v41 }
 0xa65   :  { %4536 = vmatprep.subr.bf16.mxu0 %v4732_v0 }
 0xa66   :  { %4526 = vmatpush3.bf16.msra.mxu1 %v4925_v5 }
 0xb1c   :  { %v2596_v46 = vpop.f32.mrb[24].mxu1  ;;  %v2736_v47 = vpop.f32.mrb[24].mxu0 }
 0xb1d   :  { %v3999_v52 = vpop.f32.mrb[25].mxu1  ;;  %v4037_v53 = vpop.f32.mrb[25].mxu0  ;;  %v4554_v59 = vadd.f32 %v5088_v12, %v2736_v47  ;;  %v2597_v36 = vadd.f32 %v2596_v46, %v5094_v30  ;;  %v2915_v30 = vld [vmem:[#allocation5 + $0x2f0] sm:$0xff] }
 0xb1e   :  { %v4537_v42 = vpack.c.bf16 %v2916_v33, %v2915_v30 }
 0xb1f   :  { %v3055_v19 = vmul.f32 -1.442695, %v4554_v59 }
 0xb20   :  { %4538 = vmatpush3.bf16.msra.mxu0 %v4537_v42 }
 0xb2c   :  { %v2666_v56 = vpop.f32.mrb[22].mxu1  ;;  %v2823_v61 = vpop.f32.mrb[26].mxu0 }
 0xb2d   :  { %v4552_v2 = vadd.f32 %v5084_v50, %v2666_v56  ;;  %v4018_v5 = vpop.f32.mrb[23].mxu1  ;;  %v4056_v44 = vpop.f32.mrb[27].mxu0  ;;  %v2824_v22 = vadd.f32 %v2823_v61, %v4963_v6  ;;  %v2756_v50 = vadd.f32 %v2597_v36, %v4966_v11 }
 0xb2f   :  { %v3054_v49 = vmul.f32 -1.442695, %v4552_v2 }
 0xb31   :  { %4622 = vpow2.f32 %v3054_v49 }
 0xb32   :  { %4624 = vpow2.f32 %v3055_v19 }
 0xb3b   :  { %v4623_v62 = vpop.eup %4622 }
 0xb3c   :  { %v2745_v27 = vadd.f32 1.0, %v4623_v62  ;;  %v4625_v0 = vpop.eup %4624 }
 0xb3d   :  { %v2753_v13 = vadd.f32 1.0, %v4625_v0 }
 0xb3e   :  { %4626 = vrcp.f32 %v2745_v27 }
 0xb3f   :  { %4628 = vrcp.f32 %v2753_v13 }
 0xb48   :  { %v4627_v17 = vpop.eup %4626 }
 0xb49   :  { %v2827_v24 = vmul.f32 %v4627_v17, %v2824_v22  ;;  %v4629_v12 = vpop.eup %4628 }
 0xb4a   :  { %v2830_v26 = vsub.f32 1.0, %v4629_v12  ;;  %v2832_v31 = vmul.f32 %v4629_v12, %v5280_v21 }
 0xb4b   :  { %v2828_v25 = vadd.f32 %v2827_v24, %v2756_v50 }
 0xb4d   :  { %4630 = vtanh.f32 %v2828_v25 }
 0xb57   :  { %v4631_v45 = vpop.eup %4630 }
 0xb58   :  { %v2831_v20 = vmul.f32 %v4631_v45, %v2830_v26 }
 0xb5a   :  { %v2833_v32 = vadd.f32 %v2832_v31, %v2831_v20 }
 0xb5c   :  { %4074 = vmatmul.mubr.msk.f32.vlgmr.msra.gmra.mrb[26].mxu1 %vm69_vm1, %v2833_v32 }
 0xc2f   :  { %v2903_v6 = vpop.f32.mrb[26].mxu1 }
 0xc30   :  { %v2904_v11 = vadd.f32 %v2903_v6, %v4998_v60  ;;  %v4075_v54 = vpop.f32.mrb[27].mxu1 }
 0xc32   :  { %v2907_v43 = vmax.f32 %v2904_v11, 0.0 }
 0xc34   :  { %4093 = vmatmul.mubr.msk.f32.vlgmr.msra.gmra.mrb[28].mxu0 %vm69_vm1, %v2907_v43 }
 0xd07   :  { %v2990_v58 = vpop.f32.mrb[28].mxu0 }
 0xd08   :  { %v2991_v57 = vadd.f32 %v2990_v58, %v2920_v9  ;;  %v4094_v39 = vpop.f32.mrb[29].mxu0 }
 0xd0a   :  { %2995 = vst.msk [vmem:[#allocation8] sm:$0x3] %vm2994_vm3, %v2991_v57 }
 0xd0b   :  { %4710 = shalt.err (!%p4707_p0)
}
 0xd0c   :  { %s4711_s25 = scalar_lea.hbm %s5384_s3, 32 }
 0xd0d   :  { %p4712_p1 = scmp.ne.s32.totalorder %s5384_s3, %s4711_s25  ;;  %p4715_p2 = scmp.lt.u32.totalorder %s4711_s25, %s5384_s3 }
 0xd0f   :  { %p4717_p3 = pnand %p4715_p2, %p4712_p1 }
 0xd11   :  { %4720 = shalt.err (!%p4717_p3)
}
 0xd12   :  { %3005 = dma.vmem_to_hbm [thread:$0]  %s3003_s21, 32, %s5384_s3, [#allocation4]  }
 0xd13   :  { %4725 = dma.done.wait [#allocation4], 32  }
 0xd14   :  { %4726 = vsyncadd [#allocation4], 4294967264 }
 0xd15   :  { %3009 = vsyncpa [#allocation3], 1 }
 0xd16   :  { %3010 = vsyncpa [#allocation6], 1 }
 0xd17   :  { %3011 = vsyncpa [#allocation4], 1 }

</bundles_post_ra>
